<compile_context>
chip_gen: v6e
topology: v6e:2x2x1
jax: 0.10.0
libtpu: 0.0.40
codegen_flags: <defaults>
</compile_context>

<pallas_src>
import functools

import jax
import jax.numpy as jnp
from jax.experimental import pallas as pl
from jax.experimental.pallas import tpu as pltpu


# Static A2C conv-tower geometry (kernel, stride, out-channels), as in PyTorch.
K1, S1, C1 = 8, 4, 32
K2, S2, C2 = 4, 2, 64
K3, S3, C3 = 3, 1, 64
HEAD_HIDDEN = 512


def _conv_out(n, k, s):
    return (n - k) // s + 1


# ---------------------------------------------------------------------------
# Fused forward kernel: conv1 -> conv2 -> conv3 -> (policy | value) heads.
# One grid step handles `nb` images; everything stays in VMEM.
# ---------------------------------------------------------------------------
def _a2c_fused_kernel(nb, ho1, wo1, ho2, wo2,
                      cols1_ref, w1_ref, b1_ref, w2_ref, b2_ref,
                      w3_ref, b3_ref, wh1_ref, bh1_ref, wh2_ref, bh2_ref,
                      out_ref):
    f32 = jnp.float32
    bf16 = jnp.bfloat16

    # ---- conv1: one GEMM over the pre-built im2col patches ----------------
    # cols1 rows ordered (n, wo1, ho1); lanes ordered (kh, kw, cin).
    a1 = jnp.dot(cols1_ref[...], w1_ref[...], preferred_element_type=f32)
    a1 = jnp.maximum(a1 + b1_ref[...], 0.0)               # (nb*wo1*ho1, C1) f32

    # Re-pack to rows=(n, h), lanes=(w, c): contiguous 8-row slices + concat.
    per_image = []
    for n in range(nb):
        base = n * wo1 * ho1
        per_image.append(jnp.concatenate(
            [a1[base + w * ho1: base + (w + 1) * ho1, :] for w in range(wo1)],
            axis=1))
    h1 = jnp.concatenate(per_image, axis=0)                # (nb*ho1, wo1*C1)

    # ---- conv2: im2col built in VMEM (values), then one GEMM --------------
    # cols2 rows ordered (n, ho2, wo2); lanes ordered (kh, kw, c).
    kh_pieces = []
    for kh in range(K2):
        rows = []
        for n in range(nb):
            for ho in range(ho2):
                r = n * ho1 + S2 * ho + kh
                for wo in range(wo2):
                    # contiguous lane window covers (kw, c) for kw = 0..K2-1
                    l = S2 * wo * C1
                    rows.append(h1[r:r + 1, l:l + K2 * C1])
        kh_pieces.append(jnp.concatenate(rows, axis=0))    # (nb*ho2*wo2, K2*C1)
    cols2 = jnp.concatenate(kh_pieces, axis=1)             # (nb*ho2*wo2, K2*K2*C1)

    a2 = jnp.dot(cols2.astype(bf16), w2_ref[...], preferred_element_type=f32)
    a2 = jnp.maximum(a2 + b2_ref[...], 0.0)                # (nb*ho2*wo2, C2) f32

    # ---- conv3: 3x3 kernel over the whole 3x3 map -> per-image flatten ----
    per_image = []
    for n in range(nb):
        base = n * ho2 * wo2
        per_image.append(jnp.concatenate(
            [a2[base + j: base + j + 1, :] for j in range(ho2 * wo2)], axis=1))
    cols3 = jnp.concatenate(per_image, axis=0)             # (nb, ho2*wo2*C2)

    feat = jnp.dot(cols3.astype(bf16), w3_ref[...], preferred_element_type=f32)
    feat = jnp.maximum(feat + b3_ref[...], 0.0)            # (nb, C3) = conv_out

    # ---- fused policy | value heads ----------------------------------------
    hid = jnp.dot(feat.astype(bf16), wh1_ref[...], preferred_element_type=f32)
    hid = jnp.maximum(hid + bh1_ref[...], 0.0)             # (nb, 2*HEAD_HIDDEN)
    out = jnp.dot(hid.astype(bf16), wh2_ref[...], preferred_element_type=f32)
    out = out + bh2_ref[...]                               # (nb, A+1) f32
    out_ref[...] = out.reshape(out_ref.shape)


# ---------------------------------------------------------------------------
# Wrapper: conv1 im2col on the uint8 frames (XLA glue) + the fused kernel.
# ---------------------------------------------------------------------------
def a2c_forward(x_nchw, params, num_actions, block_n=1):
    """x_nchw: uint8 frames (N, C, H, W), same convention as the PyTorch module."""
    N, cin, H, W = x_nchw.shape
    ho1, wo1 = _conv_out(H, K1, S1), _conv_out(W, K1, S1)
    ho2, wo2 = _conv_out(ho1, K2, S2), _conv_out(wo1, K2, S2)
    ho3, wo3 = _conv_out(ho2, K3, S3), _conv_out(wo2, K3, S3)
    assert ho3 == 1 and wo3 == 1 and ho2 == K3 and wo2 == K3, (
        "fused kernel assumes conv3 consumes the whole conv2 output (1x1 out)")
    nb = block_n
    assert N % nb == 0
    grid = (N // nb,)
    kpatch = K1 * K1 * cin

    # conv1 im2col on the tiny uint8 frames (fused by XLA), cast once to bf16.
    # Rows ordered (n, wo1, ho1) so each grid step gets a contiguous row block.
    xn = jnp.transpose(x_nchw, (0, 2, 3, 1))               # NCHW -> NHWC
    patches = []
    for w in range(wo1):
        for h in range(ho1):
            win = xn[:, S1 * h:S1 * h + K1, S1 * w:S1 * w + K1, :]
            patches.append(win.reshape(N, 1, kpatch))       # (kh, kw, cin) order
    cols1 = jnp.concatenate(patches, axis=1)
    cols1 = cols1.reshape(N * wo1 * ho1, kpatch).astype(jnp.bfloat16)

    def full_spec(a):
        return pl.BlockSpec(a.shape, lambda i: (0,) * a.ndim)

    weight_args = (params["w1"], params["b1"], params["w2"], params["b2"],
                   params["w3"], params["b3"], params["wh1"], params["bh1"],
                   params["wh2"], params["bh2"])

    out3 = pl.pallas_call(
        functools.partial(_a2c_fused_kernel, nb, ho1, wo1, ho2, wo2),
        out_shape=jax.ShapeDtypeStruct((N, 1, num_actions + 1), jnp.float32),
        grid=grid,
        in_specs=[pl.BlockSpec((nb * wo1 * ho1, kpatch), lambda i: (i, 0))]
                + [full_spec(a) for a in weight_args],
        out_specs=pl.BlockSpec((nb, 1, num_actions + 1), lambda i: (i, 0, 0)),
        compiler_params=pltpu.CompilerParams(
            dimension_semantics=("parallel",),
            vmem_limit_bytes=32 * 1024 * 1024),
    )(cols1, *weight_args)

    heads = out3[:, 0, :]
    return heads[:, :num_actions], heads[:, num_actions:]


# ---------------------------------------------------------------------------
# Parameter construction (kernel-ready layout)
# ---------------------------------------------------------------------------
def init_params(key, in_channels, conv_out_size, num_actions):
    ks = jax.random.split(key, 7)
    s = 0.05

    def w(k, shape):
        return jax.random.normal(k, shape, jnp.float32) * s

    bf16 = jnp.bfloat16
    c1 = w(ks[0], (K1, K1, in_channels, C1))
    c2 = w(ks[1], (K2, K2, C1, C2))
    c3 = w(ks[2], (K3, K3, C2, C3))
    p_w1 = w(ks[3], (conv_out_size, HEAD_HIDDEN))
    p_w2 = w(ks[4], (HEAD_HIDDEN, num_actions))
    v_w1 = w(ks[5], (conv_out_size, HEAD_HIDDEN))
    v_w2 = w(ks[6], (HEAD_HIDDEN, 1))

    # Block-diagonal second head layer [p_w2 0; 0 v_w2] -> one GEMM, one store.
    wh2 = jnp.zeros((2 * HEAD_HIDDEN, num_actions + 1), jnp.float32)
    wh2 = wh2.at[:HEAD_HIDDEN, :num_actions].set(p_w2)
    wh2 = wh2.at[HEAD_HIDDEN:, num_actions:].set(v_w2)

    return {
        # conv weights flattened HWIO -> (K*K*Cin, Cout); x/256 folded into w1.
        "w1": (c1 / 256.0).reshape(K1 * K1 * in_channels, C1).astype(bf16),
        "b1": jnp.zeros((1, C1), jnp.float32),
        "w2": c2.reshape(K2 * K2 * C1, C2).astype(bf16),
        "b2": jnp.zeros((1, C2), jnp.float32),
        "w3": c3.reshape(K3 * K3 * C2, C3).astype(bf16),
        "b3": jnp.zeros((1, C3), jnp.float32),
        # fused heads: first layers concatenated, second layers block-diagonal.
        "wh1": jnp.concatenate([p_w1, v_w1], axis=1).astype(bf16),
        "bh1": jnp.zeros((1, 2 * HEAD_HIDDEN), jnp.float32),
        "wh2": wh2.astype(bf16),
        "bh2": jnp.zeros((1, num_actions + 1), jnp.float32),
    }


def conv_out_size_from_shape(h, w):
    h1, w1 = _conv_out(h, K1, S1), _conv_out(w, K1, S1)
    h2, w2 = _conv_out(h1, K2, S2), _conv_out(w1, K2, S2)
    h3, w3 = _conv_out(h2, K3, S3), _conv_out(w2, K3, S3)
    return C3 * h3 * w3


if __name__ == "__main__":
    # Smallest spatial size that survives the 8/4 -> 4/2 -> 3/1 conv stack.
    batch, channels, height, width = 2, 4, 36, 36
    num_actions = 6

    key = jax.random.PRNGKey(0)
    k_x, k_p = jax.random.split(key)

    # Synthetic uint8 frame stack in NCHW, like the PyTorch module's input.
    x = jax.random.randint(k_x, (batch, channels, height, width), 0, 256,
                           dtype=jnp.int32).astype(jnp.uint8)

    conv_out = conv_out_size_from_shape(height, width)     # = 64 here
    params = init_params(k_p, channels, conv_out, num_actions)

    fwd = jax.jit(functools.partial(a2c_forward, num_actions=num_actions))
    logits, value = fwd(x, params)
    jax.block_until_ready((logits, value))

    assert logits.shape == (batch, num_actions) and logits.dtype == jnp.float32
    assert value.shape == (batch, 1) and value.dtype == jnp.float32
    print("KERNEL_OK")
</pallas_src>

<mosaic_0001>
module attributes {stable_mosaic.version = 11 : i64} {
  func.func @_a2c_fused_kernel(%arg0: i32, %arg1: memref<64x256xbf16, #tpu.memory_space<vmem>>, %arg2: memref<256x32xbf16, #tpu.memory_space<vmem>>, %arg3: memref<1x32xf32, #tpu.memory_space<vmem>>, %arg4: memref<512x64xbf16, #tpu.memory_space<vmem>>, %arg5: memref<1x64xf32, #tpu.memory_space<vmem>>, %arg6: memref<576x64xbf16, #tpu.memory_space<vmem>>, %arg7: memref<1x64xf32, #tpu.memory_space<vmem>>, %arg8: memref<64x1024xbf16, #tpu.memory_space<vmem>>, %arg9: memref<1x1024xf32, #tpu.memory_space<vmem>>, %arg10: memref<1024x7xbf16, #tpu.memory_space<vmem>>, %arg11: memref<1x7xf32, #tpu.memory_space<vmem>>, %arg12: memref<1x1x7xf32, #tpu.memory_space<vmem>>) attributes {dimension_semantics = [#tpu.dimension_semantics<parallel>], iteration_bounds = array<i64: 2>, scalar_prefetch = 0 : i64, scratch_operands = 0 : i64, tpu.core_type = #tpu.core_type<tc>, window_params = [{transform_indices = @transform_0, window_bounds = array<i64: 64, 256>}, {pipeline_mode = #tpu.pipeline_mode<synchronous>, transform_indices = @transform_1, window_bounds = array<i64: 256, 32>}, {pipeline_mode = #tpu.pipeline_mode<synchronous>, transform_indices = @transform_2, window_bounds = array<i64: 1, 32>}, {pipeline_mode = #tpu.pipeline_mode<synchronous>, transform_indices = @transform_3, window_bounds = array<i64: 512, 64>}, {pipeline_mode = #tpu.pipeline_mode<synchronous>, transform_indices = @transform_4, window_bounds = array<i64: 1, 64>}, {pipeline_mode = #tpu.pipeline_mode<synchronous>, transform_indices = @transform_5, window_bounds = array<i64: 576, 64>}, {pipeline_mode = #tpu.pipeline_mode<synchronous>, transform_indices = @transform_6, window_bounds = array<i64: 1, 64>}, {pipeline_mode = #tpu.pipeline_mode<synchronous>, transform_indices = @transform_7, window_bounds = array<i64: 64, 1024>}, {pipeline_mode = #tpu.pipeline_mode<synchronous>, transform_indices = @transform_8, window_bounds = array<i64: 1, 1024>}, {pipeline_mode = #tpu.pipeline_mode<synchronous>, transform_indices = @transform_9, window_bounds = array<i64: 1024, 7>}, {pipeline_mode = #tpu.pipeline_mode<synchronous>, transform_indices = @transform_10, window_bounds = array<i64: 1, 7>}, {transform_indices = @transform_11, window_bounds = array<i64: 1, 1, 7>}]} {
    %c0 = arith.constant 0 : index
    %c0_0 = arith.constant 0 : index
    %0 = vector.load %arg1[%c0, %c0_0] : memref<64x256xbf16, #tpu.memory_space<vmem>>, vector<64x256xbf16>
    %c0_1 = arith.constant 0 : index
    %c0_2 = arith.constant 0 : index
    %1 = vector.load %arg2[%c0_1, %c0_2] : memref<256x32xbf16, #tpu.memory_space<vmem>>, vector<256x32xbf16>
    %cst = arith.constant dense<0.000000e+00> : vector<64x32xf32>
    %2 = tpu.matmul %0, %1, %cst {dimension_numbers = #tpu.dot_dimension_numbers<[1], [0], [0], [1], [0, 0, 1, 1], [], []>} : vector<64x256xbf16>, vector<256x32xbf16>, vector<64x32xf32> -> vector<64x32xf32>
    %c0_3 = arith.constant 0 : index
    %c0_4 = arith.constant 0 : index
    %3 = vector.load %arg3[%c0_3, %c0_4] : memref<1x32xf32, #tpu.memory_space<vmem>>, vector<1x32xf32>
    %4 = vector.broadcast %3 : vector<1x32xf32> to vector<64x32xf32>
    %5 = arith.addf %2, %4 : vector<64x32xf32>
    %cst_5 = arith.constant 0.000000e+00 : f32
    %6 = vector.broadcast %cst_5 : f32 to vector<64x32xf32>
    %7 = arith.maximumf %5, %6 : vector<64x32xf32>
    %8 = vector.extract_strided_slice %7 {offsets = [0, 0], sizes = [8, 32], strides = [1, 1]} : vector<64x32xf32> to vector<8x32xf32>
    %9 = vector.extract_strided_slice %7 {offsets = [8, 0], sizes = [8, 32], strides = [1, 1]} : vector<64x32xf32> to vector<8x32xf32>
    %10 = vector.extract_strided_slice %7 {offsets = [16, 0], sizes = [8, 32], strides = [1, 1]} : vector<64x32xf32> to vector<8x32xf32>
    %11 = vector.extract_strided_slice %7 {offsets = [24, 0], sizes = [8, 32], strides = [1, 1]} : vector<64x32xf32> to vector<8x32xf32>
    %12 = vector.extract_strided_slice %7 {offsets = [32, 0], sizes = [8, 32], strides = [1, 1]} : vector<64x32xf32> to vector<8x32xf32>
    %13 = vector.extract_strided_slice %7 {offsets = [40, 0], sizes = [8, 32], strides = [1, 1]} : vector<64x32xf32> to vector<8x32xf32>
    %14 = vector.extract_strided_slice %7 {offsets = [48, 0], sizes = [8, 32], strides = [1, 1]} : vector<64x32xf32> to vector<8x32xf32>
    %15 = vector.extract_strided_slice %7 {offsets = [56, 0], sizes = [8, 32], strides = [1, 1]} : vector<64x32xf32> to vector<8x32xf32>
    %16 = tpu.concatenate %8, %9, %10, %11, %12, %13, %14, %15 in 1 : vector<8x32xf32>, vector<8x32xf32>, vector<8x32xf32>, vector<8x32xf32>, vector<8x32xf32>, vector<8x32xf32>, vector<8x32xf32>, vector<8x32xf32> -> vector<8x256xf32>
    %17 = vector.extract_strided_slice %16 {offsets = [0, 0], sizes = [1, 128], strides = [1, 1]} : vector<8x256xf32> to vector<1x128xf32>
    %18 = vector.extract_strided_slice %16 {offsets = [0, 64], sizes = [1, 128], strides = [1, 1]} : vector<8x256xf32> to vector<1x128xf32>
    %19 = vector.extract_strided_slice %16 {offsets = [0, 128], sizes = [1, 128], strides = [1, 1]} : vector<8x256xf32> to vector<1x128xf32>
    %20 = vector.extract_strided_slice %16 {offsets = [2, 0], sizes = [1, 128], strides = [1, 1]} : vector<8x256xf32> to vector<1x128xf32>
    %21 = vector.extract_strided_slice %16 {offsets = [2, 64], sizes = [1, 128], strides = [1, 1]} : vector<8x256xf32> to vector<1x128xf32>
    %22 = vector.extract_strided_slice %16 {offsets = [2, 128], sizes = [1, 128], strides = [1, 1]} : vector<8x256xf32> to vector<1x128xf32>
    %23 = vector.extract_strided_slice %16 {offsets = [4, 0], sizes = [1, 128], strides = [1, 1]} : vector<8x256xf32> to vector<1x128xf32>
    %24 = vector.extract_strided_slice %16 {offsets = [4, 64], sizes = [1, 128], strides = [1, 1]} : vector<8x256xf32> to vector<1x128xf32>
    %25 = vector.extract_strided_slice %16 {offsets = [4, 128], sizes = [1, 128], strides = [1, 1]} : vector<8x256xf32> to vector<1x128xf32>
    %26 = tpu.concatenate %17, %18, %19, %20, %21, %22, %23, %24, %25 in 0 : vector<1x128xf32>, vector<1x128xf32>, vector<1x128xf32>, vector<1x128xf32>, vector<1x128xf32>, vector<1x128xf32>, vector<1x128xf32>, vector<1x128xf32>, vector<1x128xf32> -> vector<9x128xf32>
    %27 = vector.extract_strided_slice %16 {offsets = [1, 0], sizes = [1, 128], strides = [1, 1]} : vector<8x256xf32> to vector<1x128xf32>
    %28 = vector.extract_strided_slice %16 {offsets = [1, 64], sizes = [1, 128], strides = [1, 1]} : vector<8x256xf32> to vector<1x128xf32>
    %29 = vector.extract_strided_slice %16 {offsets = [1, 128], sizes = [1, 128], strides = [1, 1]} : vector<8x256xf32> to vector<1x128xf32>
    %30 = vector.extract_strided_slice %16 {offsets = [3, 0], sizes = [1, 128], strides = [1, 1]} : vector<8x256xf32> to vector<1x128xf32>
    %31 = vector.extract_strided_slice %16 {offsets = [3, 64], sizes = [1, 128], strides = [1, 1]} : vector<8x256xf32> to vector<1x128xf32>
    %32 = vector.extract_strided_slice %16 {offsets = [3, 128], sizes = [1, 128], strides = [1, 1]} : vector<8x256xf32> to vector<1x128xf32>
    %33 = vector.extract_strided_slice %16 {offsets = [5, 0], sizes = [1, 128], strides = [1, 1]} : vector<8x256xf32> to vector<1x128xf32>
    %34 = vector.extract_strided_slice %16 {offsets = [5, 64], sizes = [1, 128], strides = [1, 1]} : vector<8x256xf32> to vector<1x128xf32>
    %35 = vector.extract_strided_slice %16 {offsets = [5, 128], sizes = [1, 128], strides = [1, 1]} : vector<8x256xf32> to vector<1x128xf32>
    %36 = tpu.concatenate %27, %28, %29, %30, %31, %32, %33, %34, %35 in 0 : vector<1x128xf32>, vector<1x128xf32>, vector<1x128xf32>, vector<1x128xf32>, vector<1x128xf32>, vector<1x128xf32>, vector<1x128xf32>, vector<1x128xf32>, vector<1x128xf32> -> vector<9x128xf32>
    %37 = vector.extract_strided_slice %16 {offsets = [2, 0], sizes = [1, 128], strides = [1, 1]} : vector<8x256xf32> to vector<1x128xf32>
    %38 = vector.extract_strided_slice %16 {offsets = [2, 64], sizes = [1, 128], strides = [1, 1]} : vector<8x256xf32> to vector<1x128xf32>
    %39 = vector.extract_strided_slice %16 {offsets = [2, 128], sizes = [1, 128], strides = [1, 1]} : vector<8x256xf32> to vector<1x128xf32>
    %40 = vector.extract_strided_slice %16 {offsets = [4, 0], sizes = [1, 128], strides = [1, 1]} : vector<8x256xf32> to vector<1x128xf32>
    %41 = vector.extract_strided_slice %16 {offsets = [4, 64], sizes = [1, 128], strides = [1, 1]} : vector<8x256xf32> to vector<1x128xf32>
    %42 = vector.extract_strided_slice %16 {offsets = [4, 128], sizes = [1, 128], strides = [1, 1]} : vector<8x256xf32> to vector<1x128xf32>
    %43 = vector.extract_strided_slice %16 {offsets = [6, 0], sizes = [1, 128], strides = [1, 1]} : vector<8x256xf32> to vector<1x128xf32>
    %44 = vector.extract_strided_slice %16 {offsets = [6, 64], sizes = [1, 128], strides = [1, 1]} : vector<8x256xf32> to vector<1x128xf32>
    %45 = vector.extract_strided_slice %16 {offsets = [6, 128], sizes = [1, 128], strides = [1, 1]} : vector<8x256xf32> to vector<1x128xf32>
    %46 = tpu.concatenate %37, %38, %39, %40, %41, %42, %43, %44, %45 in 0 : vector<1x128xf32>, vector<1x128xf32>, vector<1x128xf32>, vector<1x128xf32>, vector<1x128xf32>, vector<1x128xf32>, vector<1x128xf32>, vector<1x128xf32>, vector<1x128xf32> -> vector<9x128xf32>
    %47 = vector.extract_strided_slice %16 {offsets = [3, 0], sizes = [1, 128], strides = [1, 1]} : vector<8x256xf32> to vector<1x128xf32>
    %48 = vector.extract_strided_slice %16 {offsets = [3, 64], sizes = [1, 128], strides = [1, 1]} : vector<8x256xf32> to vector<1x128xf32>
    %49 = vector.extract_strided_slice %16 {offsets = [3, 128], sizes = [1, 128], strides = [1, 1]} : vector<8x256xf32> to vector<1x128xf32>
    %50 = vector.extract_strided_slice %16 {offsets = [5, 0], sizes = [1, 128], strides = [1, 1]} : vector<8x256xf32> to vector<1x128xf32>
    %51 = vector.extract_strided_slice %16 {offsets = [5, 64], sizes = [1, 128], strides = [1, 1]} : vector<8x256xf32> to vector<1x128xf32>
    %52 = vector.extract_strided_slice %16 {offsets = [5, 128], sizes = [1, 128], strides = [1, 1]} : vector<8x256xf32> to vector<1x128xf32>
    %53 = vector.extract_strided_slice %16 {offsets = [7, 0], sizes = [1, 128], strides = [1, 1]} : vector<8x256xf32> to vector<1x128xf32>
    %54 = vector.extract_strided_slice %16 {offsets = [7, 64], sizes = [1, 128], strides = [1, 1]} : vector<8x256xf32> to vector<1x128xf32>
    %55 = vector.extract_strided_slice %16 {offsets = [7, 128], sizes = [1, 128], strides = [1, 1]} : vector<8x256xf32> to vector<1x128xf32>
    %56 = tpu.concatenate %47, %48, %49, %50, %51, %52, %53, %54, %55 in 0 : vector<1x128xf32>, vector<1x128xf32>, vector<1x128xf32>, vector<1x128xf32>, vector<1x128xf32>, vector<1x128xf32>, vector<1x128xf32>, vector<1x128xf32>, vector<1x128xf32> -> vector<9x128xf32>
    %57 = tpu.concatenate %26, %36, %46, %56 in 1 : vector<9x128xf32>, vector<9x128xf32>, vector<9x128xf32>, vector<9x128xf32> -> vector<9x512xf32>
    %58 = arith.truncf %57 : vector<9x512xf32> to vector<9x512xbf16>
    %c0_6 = arith.constant 0 : index
    %c0_7 = arith.constant 0 : index
    %59 = vector.load %arg4[%c0_6, %c0_7] : memref<512x64xbf16, #tpu.memory_space<vmem>>, vector<512x64xbf16>
    %cst_8 = arith.constant dense<0.000000e+00> : vector<9x64xf32>
    %60 = tpu.matmul %58, %59, %cst_8 {dimension_numbers = #tpu.dot_dimension_numbers<[1], [0], [0], [1], [0, 0, 1, 1], [], []>} : vector<9x512xbf16>, vector<512x64xbf16>, vector<9x64xf32> -> vector<9x64xf32>
    %c0_9 = arith.constant 0 : index
    %c0_10 = arith.constant 0 : index
    %61 = vector.load %arg5[%c0_9, %c0_10] : memref<1x64xf32, #tpu.memory_space<vmem>>, vector<1x64xf32>
    %62 = vector.broadcast %61 : vector<1x64xf32> to vector<9x64xf32>
    %63 = arith.addf %60, %62 : vector<9x64xf32>
    %cst_11 = arith.constant 0.000000e+00 : f32
    %64 = vector.broadcast %cst_11 : f32 to vector<9x64xf32>
    %65 = arith.maximumf %63, %64 : vector<9x64xf32>
    %66 = vector.extract_strided_slice %65 {offsets = [0, 0], sizes = [1, 64], strides = [1, 1]} : vector<9x64xf32> to vector<1x64xf32>
    %67 = vector.extract_strided_slice %65 {offsets = [1, 0], sizes = [1, 64], strides = [1, 1]} : vector<9x64xf32> to vector<1x64xf32>
    %68 = vector.extract_strided_slice %65 {offsets = [2, 0], sizes = [1, 64], strides = [1, 1]} : vector<9x64xf32> to vector<1x64xf32>
    %69 = vector.extract_strided_slice %65 {offsets = [3, 0], sizes = [1, 64], strides = [1, 1]} : vector<9x64xf32> to vector<1x64xf32>
    %70 = vector.extract_strided_slice %65 {offsets = [4, 0], sizes = [1, 64], strides = [1, 1]} : vector<9x64xf32> to vector<1x64xf32>
    %71 = vector.extract_strided_slice %65 {offsets = [5, 0], sizes = [1, 64], strides = [1, 1]} : vector<9x64xf32> to vector<1x64xf32>
    %72 = vector.extract_strided_slice %65 {offsets = [6, 0], sizes = [1, 64], strides = [1, 1]} : vector<9x64xf32> to vector<1x64xf32>
    %73 = vector.extract_strided_slice %65 {offsets = [7, 0], sizes = [1, 64], strides = [1, 1]} : vector<9x64xf32> to vector<1x64xf32>
    %74 = vector.extract_strided_slice %65 {offsets = [8, 0], sizes = [1, 64], strides = [1, 1]} : vector<9x64xf32> to vector<1x64xf32>
    %75 = tpu.concatenate %66, %67, %68, %69, %70, %71, %72, %73, %74 in 1 : vector<1x64xf32>, vector<1x64xf32>, vector<1x64xf32>, vector<1x64xf32>, vector<1x64xf32>, vector<1x64xf32>, vector<1x64xf32>, vector<1x64xf32>, vector<1x64xf32> -> vector<1x576xf32>
    %76 = arith.truncf %75 : vector<1x576xf32> to vector<1x576xbf16>
    %c0_12 = arith.constant 0 : index
    %c0_13 = arith.constant 0 : index
    %77 = vector.load %arg6[%c0_12, %c0_13] : memref<576x64xbf16, #tpu.memory_space<vmem>>, vector<576x64xbf16>
    %cst_14 = arith.constant dense<0.000000e+00> : vector<1x64xf32>
    %78 = tpu.matmul %76, %77, %cst_14 {dimension_numbers = #tpu.dot_dimension_numbers<[1], [0], [0], [1], [0, 0, 1, 1], [], []>} : vector<1x576xbf16>, vector<576x64xbf16>, vector<1x64xf32> -> vector<1x64xf32>
    %c0_15 = arith.constant 0 : index
    %c0_16 = arith.constant 0 : index
    %79 = vector.load %arg7[%c0_15, %c0_16] : memref<1x64xf32, #tpu.memory_space<vmem>>, vector<1x64xf32>
    %80 = arith.addf %78, %79 : vector<1x64xf32>
    %cst_17 = arith.constant 0.000000e+00 : f32
    %81 = vector.broadcast %cst_17 : f32 to vector<1x64xf32>
    %82 = arith.maximumf %80, %81 : vector<1x64xf32>
    %83 = arith.truncf %82 : vector<1x64xf32> to vector<1x64xbf16>
    %c0_18 = arith.constant 0 : index
    %c0_19 = arith.constant 0 : index
    %84 = vector.load %arg8[%c0_18, %c0_19] : memref<64x1024xbf16, #tpu.memory_space<vmem>>, vector<64x1024xbf16>
    %cst_20 = arith.constant dense<0.000000e+00> : vector<1x1024xf32>
    %85 = tpu.matmul %83, %84, %cst_20 {dimension_numbers = #tpu.dot_dimension_numbers<[1], [0], [0], [1], [0, 0, 1, 1], [], []>} : vector<1x64xbf16>, vector<64x1024xbf16>, vector<1x1024xf32> -> vector<1x1024xf32>
    %c0_21 = arith.constant 0 : index
    %c0_22 = arith.constant 0 : index
    %86 = vector.load %arg9[%c0_21, %c0_22] : memref<1x1024xf32, #tpu.memory_space<vmem>>, vector<1x1024xf32>
    %87 = arith.addf %85, %86 : vector<1x1024xf32>
    %cst_23 = arith.constant 0.000000e+00 : f32
    %88 = vector.broadcast %cst_23 : f32 to vector<1x1024xf32>
    %89 = arith.maximumf %87, %88 : vector<1x1024xf32>
    %90 = arith.truncf %89 : vector<1x1024xf32> to vector<1x1024xbf16>
    %c0_24 = arith.constant 0 : index
    %c0_25 = arith.constant 0 : index
    %91 = vector.load %arg10[%c0_24, %c0_25] : memref<1024x7xbf16, #tpu.memory_space<vmem>>, vector<1024x7xbf16>
    %cst_26 = arith.constant dense<0.000000e+00> : vector<1x7xf32>
    %92 = tpu.matmul %90, %91, %cst_26 {dimension_numbers = #tpu.dot_dimension_numbers<[1], [0], [0], [1], [0, 0, 1, 1], [], []>} : vector<1x1024xbf16>, vector<1024x7xbf16>, vector<1x7xf32> -> vector<1x7xf32>
    %c0_27 = arith.constant 0 : index
    %c0_28 = arith.constant 0 : index
    %93 = vector.load %arg11[%c0_27, %c0_28] : memref<1x7xf32, #tpu.memory_space<vmem>>, vector<1x7xf32>
    %94 = arith.addf %92, %93 : vector<1x7xf32>
    %95 = vector.shape_cast %94 : vector<1x7xf32> to vector<1x1x7xf32>
    %c0_29 = arith.constant 0 : index
    %c0_30 = arith.constant 0 : index
    %c0_31 = arith.constant 0 : index
    %96 = vector.load %arg12[%c0_29, %c0_30, %c0_31] : memref<1x1x7xf32, #tpu.memory_space<vmem>>, vector<1x1x7xf32>
    tpu.vector_store %arg12[%c0_29, %c0_30, %c0_31], %95 {strides = array<i32>} : memref<1x1x7xf32, #tpu.memory_space<vmem>>, vector<1x1x7xf32>,
    return
  }
  func.func @transform_0(%arg0: i32) -> (i32, i32) {
    %c0_i32 = arith.constant 0 : i32
    %c0_i32_0 = arith.constant 0 : i32
    return %arg0, %c0_i32 : i32, i32
  }
  func.func @transform_1(%arg0: i32) -> (i32, i32) {
    %c0_i32 = arith.constant 0 : i32
    %c0_i32_0 = arith.constant 0 : i32
    %c0_i32_1 = arith.constant 0 : i32
    return %c0_i32, %c0_i32_0 : i32, i32
  }
  func.func @transform_2(%arg0: i32) -> (i32, i32) {
    %c0_i32 = arith.constant 0 : i32
    %c0_i32_0 = arith.constant 0 : i32
    %c0_i32_1 = arith.constant 0 : i32
    return %c0_i32, %c0_i32_0 : i32, i32
  }
  func.func @transform_3(%arg0: i32) -> (i32, i32) {
    %c0_i32 = arith.constant 0 : i32
    %c0_i32_0 = arith.constant 0 : i32
    %c0_i32_1 = arith.constant 0 : i32
    return %c0_i32, %c0_i32_0 : i32, i32
  }
  func.func @transform_4(%arg0: i32) -> (i32, i32) {
    %c0_i32 = arith.constant 0 : i32
    %c0_i32_0 = arith.constant 0 : i32
    %c0_i32_1 = arith.constant 0 : i32
    return %c0_i32, %c0_i32_0 : i32, i32
  }
  func.func @transform_5(%arg0: i32) -> (i32, i32) {
    %c0_i32 = arith.constant 0 : i32
    %c0_i32_0 = arith.constant 0 : i32
    %c0_i32_1 = arith.constant 0 : i32
    return %c0_i32, %c0_i32_0 : i32, i32
  }
  func.func @transform_6(%arg0: i32) -> (i32, i32) {
    %c0_i32 = arith.constant 0 : i32
    %c0_i32_0 = arith.constant 0 : i32
    %c0_i32_1 = arith.constant 0 : i32
    return %c0_i32, %c0_i32_0 : i32, i32
  }
  func.func @transform_7(%arg0: i32) -> (i32, i32) {
    %c0_i32 = arith.constant 0 : i32
    %c0_i32_0 = arith.constant 0 : i32
    %c0_i32_1 = arith.constant 0 : i32
    return %c0_i32, %c0_i32_0 : i32, i32
  }
  func.func @transform_8(%arg0: i32) -> (i32, i32) {
    %c0_i32 = arith.constant 0 : i32
    %c0_i32_0 = arith.constant 0 : i32
    %c0_i32_1 = arith.constant 0 : i32
    return %c0_i32, %c0_i32_0 : i32, i32
  }
  func.func @transform_9(%arg0: i32) -> (i32, i32) {
    %c0_i32 = arith.constant 0 : i32
    %c0_i32_0 = arith.constant 0 : i32
    %c0_i32_1 = arith.constant 0 : i32
    return %c0_i32, %c0_i32_0 : i32, i32
  }
  func.func @transform_10(%arg0: i32) -> (i32, i32) {
    %c0_i32 = arith.constant 0 : i32
    %c0_i32_0 = arith.constant 0 : i32
    %c0_i32_1 = arith.constant 0 : i32
    return %c0_i32, %c0_i32_0 : i32, i32
  }
  func.func @transform_11(%arg0: i32) -> (i32, i32, i32) {
    %c0_i32 = arith.constant 0 : i32
    %c0_i32_0 = arith.constant 0 : i32
    %c0_i32_1 = arith.constant 0 : i32
    return %arg0, %c0_i32, %c0_i32_0 : i32, i32, i32
  }
}

</mosaic_0001>

<bundles_post_ra>
// kernel: a2c_forward.1
= control target key start
LH: loop header
LB: loop body
LE: loop exit
PB: predicated region body
PF: predicated region fallthrough
CT: control target
= control target key end

     0   :  { %s3451_s17 = smov 0   ;;  %s4178_s0 = inlined_call_operand.vmem [shape: bf16[128,256], index: 0, kind: input, shape index: {}]   ;;  %s4179_s1 = inlined_call_operand.vmem [shape: bf16[256,32], index: 1, kind: input, shape index: {}]   ;;  %s4180_s2 = inlined_call_operand.vmem [shape: f32[1,32], index: 2, kind: input, shape index: {}]   ;;  %s4181_s3 = inlined_call_operand.vmem [shape: bf16[512,64], index: 3, kind: input, shape index: {}]   ;;  %s4182_s4 = inlined_call_operand.vmem [shape: f32[1,64], index: 4, kind: input, shape index: {}]   ;;  %s4183_s5 = inlined_call_operand.vmem [shape: bf16[576,64], index: 5, kind: input, shape index: {}]   ;;  %s4184_s6 = inlined_call_operand.vmem [shape: f32[1,64], index: 6, kind: input, shape index: {}]   ;;  %s4185_s7 = inlined_call_operand.vmem [shape: bf16[64,1024], index: 7, kind: input, shape index: {}]   ;;  %s4186_s8 = inlined_call_operand.vmem [shape: f32[1,1024], index: 8, kind: input, shape index: {}]   ;;  %s4187_s9 = inlined_call_operand.vmem [shape: bf16[1024,7], index: 9, kind: input, shape index: {}]   ;;  %s4188_s10 = inlined_call_operand.vmem [shape: f32[1,7], index: 10, kind: input, shape index: {}]   ;;  %s4189_s11 = inlined_call_operand.vmem [shape: f32[2,1,7], index: 11, kind: output, shape index: {}]  }
   0x1 LB: > { %s3457_s18 = sadd.s32 4294967295, %s3383_s17   ;;  %p2713_p0 = scmp.ge.s32.totalorder %s3383_s17, 1  ;;  %s3383_s17 = sphi %s3451_s17, %s21_s17  }
   0x2   : > { %p339_p1 = scmp.lt.s32.totalorder %s3383_s17, 3 }
   0x4   : > { %p340_p2 = pnand %p2713_p0, %p339_p1 }
   0x5   : > { %s2714_s21 = sshll.u32 (!%p340_p2), %s3457_s18, 3  ;;  %s3386_s26 = smov (!%p340_p2), 64  }
   0x6   : > { %343 = sbr.rel (%p340_p2) target bundleno = 1507 (0x5e3), region = 64  ;;  %p379_p3 = scmp.lt.s32.totalorder (!%p340_p2), %s2714_s21, 15 }
   0x7   : > { %s3387_s27 = smov (!%p340_p2), 96   ;;  %p385_p4 = scmp.lt.s32.totalorder (!%p340_p2), %s3457_s18, 1 }
   0xb   : > { %v3217_v0 = vld [vmem:[%s4179_s1 + $0x78] sm:$0xff]   ;;  %v3219_v2 = vld [vmem:[%s4179_s1 + $0x70] sm:$0xff]   ;;  %v3221_v4 = vld [vmem:[%s4179_s1 + $0x68] sm:$0xff]   ;;  %s4191_s21 = smov (!%p379_p3, %s2714_s21), 15  ;;  %vm669_vm0 = vcmask 261120   ;;  %vm671_vm1 = vcmask 523264  }
   0xc   : > { %v3218_v1 = vld [vmem:[%s4179_s1 + $0x38] sm:$0xff]   ;;  %2915 = vmatprep.subr.bf16.mxu0 %v3217_v0  ;;  %v3220_v3 = vld [vmem:[%s4179_s1 + $0x30] sm:$0xff]   ;;  %v3222_v5 = vld [vmem:[%s4179_s1 + $0x28] sm:$0xff]   ;;  %s2914_s19 = sshll.u32 %s4191_s21, 3  ;;  %vm673_vm2 = vcmask 785408   ;;  %vm710_vm3 = vcmask 1040384  }
   0xd   : > { %2916 = vmatpush3.bf16.msra.mxu0 %v3218_v1  ;;  %v3223_v6 = vld [vmem:[%s4179_s1 + $0x60] sm:$0xff]   ;;  %v3225_v8 = vld [vmem:[%s4179_s1 + $0x58] sm:$0xff]   ;;  %s3492_s25 = scalar_lea.vmem %s4178_s0, %s2914_s19  ;;  %v3227_v10 = vld [vmem:[%s4179_s1 + $0x50] sm:$0xff]   ;;  %vm712_vm4 = vcmask 1041408   ;;  %vm714_vm5 = vcmask 1042432   ;;  %vm716_vm6 = vcmask 1043456  }
   0xe   : > { %2917 = vmatprep.subr.bf16.mxu0 %v3219_v2  ;;  %v3224_v7 = vld [vmem:[%s4179_s1 + $0x20] sm:$0xff]   ;;  %v3226_v9 = vld [vmem:[%s4179_s1 + $0x18] sm:$0xff]   ;;  %v3228_v12 = vld [vmem:[%s4179_s1 + $0x10] sm:$0xff]   ;;  %vm718_vm7 = vcmask 1044480   ;;  %vm720_vm8 = vcmask 1045504   ;;  %vm722_vm9 = vcmask 1046528  }
   0xf   : > { %v3235_v11 = vld [vmem:[%s3492_s25 + $0x4] ss:$8 sps:$4 sm:$0xff]   ;;  %v3233_v17 = vld [vmem:[%s3492_s25] ss:$8 sps:$4 sm:$0xff]   ;;  %v3236_v18 = vld [vmem:[%s3492_s25 + $0x14] ss:$8 sps:$4 sm:$0xff]  }
  0x10   : > { %604 = vmatprep.mubr.bf16.mxu0 %v3235_v11  ;;  %v3229_v13 = vld [vmem:[%s4179_s1 + $0x48] sm:$0xff]   ;;  %v3231_v15 = vld [vmem:[%s4179_s1 + $0x40] sm:$0xff]   ;;  %v3238_v19 = vld [vmem:[%s3492_s25 + $0x10] ss:$8 sps:$4 sm:$0xff]   ;;  %vm3389_vm10 = vmmov 0   ;;  %s4193_s18 = smov (!%p385_p4, %s3457_s18), 1 }
  0x11   : > { %2918 = vmatpush3.bf16.msra.mxu0 %v3220_v3  ;;  %v3230_v14 = vld [vmem:[%s4179_s1 + $0x8] sm:$0xff]   ;;  %v3232_v16 = vld [vmem:[%s4179_s1] sm:$0xff]   ;;  %v3242_v22 = vld [vmem:[%s3492_s25 + $0x34] ss:$8 sps:$4 sm:$0xff]   ;;  %s387_s13 = scalar_lea.vmem %s4189_s11, %s4193_s18  ;;  %vm2660_vm11 = vcmask 49152  }
  0x12   : > { %2919 = vmatprep.subr.bf16.mxu0 %v3221_v4  ;;  %v3239_v20 = vld [vmem:[%s3492_s25 + $0x24] ss:$8 sps:$4 sm:$0xff]   ;;  %v3241_v21 = vld [vmem:[%s3492_s25 + $0x20] ss:$8 sps:$4 sm:$0xff]   ;;  %v3244_v23 = vld [vmem:[%s3492_s25 + $0x30] ss:$8 sps:$4 sm:$0xff]  }
  0x13   : > { %v2717_v25 = vld [vmem:[%s4180_s2] ss:$0 sm:$0xff]  ;;  %s3385_s25 = smov 32   ;;  %v3245_v2 = vld [vmem:[%s4181_s3 + $0x78] sm:$0xff]   ;;  %v3255_v11 = vld [vmem:[%s4181_s3 + $0xe8] sm:$0xff]  }
  0x14   : > { %v3246_v3 = vld [vmem:[%s4181_s3 + $0x38] sm:$0xff]   ;;  %2955 = vmatprep.subr.bf16.mxu1 %v3245_v2 }
  0x15   : > { %2920 = vmatpush3.bf16.msra.mxu0 %v3222_v5  ;;  %v3247_v4 = vld [vmem:[%s4181_s3 + $0xf8] sm:$0xff]   ;;  %2956 = vmatpush3.bf16.msra.mxu1 %v3246_v3 }
  0x16   : > { %2921 = vmatprep.subr.bf16.mxu0 %v3223_v6  ;;  %v3248_v5 = vld [vmem:[%s4181_s3 + $0xb8] sm:$0xff]   ;;  %v3249_v6 = vld [vmem:[%s4181_s3 + $0x70] sm:$0xff]  }
  0x17   : > { %2957 = vmatprep.subr.bf16.mxu1 %v3249_v6 }
  0x19   : > { %2922 = vmatpush3.bf16.msra.mxu0 %v3224_v7  ;;  %v3251_v7 = vld [vmem:[%s4181_s3 + $0xf0] sm:$0xff]  }
  0x1a   : > { %2923 = vmatprep.subr.bf16.mxu0 %v3225_v8  ;;  %v3250_v8 = vld [vmem:[%s4181_s3 + $0x30] sm:$0xff]  }
  0x1b   : > { %2958 = vmatpush3.bf16.msra.mxu1 %v3250_v8 }
  0x1d   : > { %2924 = vmatpush3.bf16.msra.mxu0 %v3226_v9  ;;  %v3252_v9 = vld [vmem:[%s4181_s3 + $0xb0] sm:$0xff]  }
  0x1e   : > { %2925 = vmatprep.subr.bf16.mxu0 %v3227_v10  ;;  %v3253_v10 = vld [vmem:[%s4181_s3 + $0x68] sm:$0xff]  }
  0x1f   : > { %2959 = vmatprep.subr.bf16.mxu1 %v3253_v10 }
  0x21   : > { %2926 = vmatpush3.bf16.msra.mxu0 %v3228_v12  ;;  %v3254_v12 = vld [vmem:[%s4181_s3 + $0x28] sm:$0xff]  }
  0x22   : > { %2927 = vmatprep.subr.bf16.mxu0 %v3229_v13  ;;  %v3256_v13 = vld [vmem:[%s4181_s3 + $0xa8] sm:$0xff]   ;;  %2960 = vmatpush3.bf16.msra.mxu1 %v3254_v12 }
  0x25   : > { %2928 = vmatpush3.bf16.msra.mxu0 %v3230_v14  ;;  %v3257_v14 = vld [vmem:[%s4181_s3 + $0x60] sm:$0xff]  }
  0x26   : > { %2929 = vmatprep.subr.bf16.mxu0 %v3231_v15  ;;  %v3259_v15 = vld [vmem:[%s4181_s3 + $0xe0] sm:$0xff]   ;;  %2961 = vmatprep.subr.bf16.mxu1 %v3257_v14 }
  0x29   : > { %2930 = vmatpush3.bf16.msra.mxu0 %v3232_v16  ;;  %v3258_v16 = vld [vmem:[%s4181_s3 + $0x20] sm:$0xff]  }
  0x2a   : > { %2977 = vmatprep.subr.bf16.mxu0 %v3247_v4  ;;  %2962 = vmatpush3.bf16.msra.mxu1 %v3258_v16 }
  0x2c   : > { %605 = vmatmul.mubr.bf16.vlgmr.msra.gmra.mxu0 %v3233_v17  ;;  %v3260_v17 = vld [vmem:[%s4181_s3 + $0xa0] sm:$0xff]  }
  0x2d   : > { %612 = vmatprep.mubr.bf16.mxu0 %v3236_v18  ;;  %2978 = vmatpush3.bf16.msra.mxu0 %v3248_v5 }
  0x2e   : > { %2979 = vmatprep.subr.bf16.mxu0 %v3251_v7 }
  0x31   : > { %2980 = vmatpush3.bf16.msra.mxu0 %v3252_v9 }
  0x32   : > { %2981 = vmatprep.subr.bf16.mxu0 %v3255_v11 }
  0x34   : > { %613 = vmatmul.mubr.bf16.gmra.mxu0 %v3238_v19  ;;  %v3261_v19 = vld [vmem:[%s4181_s3 + $0x58] sm:$0xff]  }
  0x35   : > { %620 = vmatprep.mubr.bf16.mxu0 %v3239_v20  ;;  %2982 = vmatpush3.bf16.msra.mxu0 %v3256_v13  ;;  %v3262_v20 = vld [vmem:[%s4181_s3 + $0x18] sm:$0xff]  }
  0x36   : > { %2983 = vmatprep.subr.bf16.mxu0 %v3259_v15  ;;  %2963 = vmatprep.subr.bf16.mxu1 %v3261_v19 }
  0x37   : > { %2964 = vmatpush3.bf16.msra.mxu1 %v3262_v20 }
  0x39   : > { %2984 = vmatpush3.bf16.msra.mxu0 %v3260_v17 }
  0x3c   : > { %621 = vmatmul.mubr.bf16.gmra.mxu0 %v3241_v21  ;;  %v3263_v21 = vld [vmem:[%s4181_s3 + $0xd8] sm:$0xff]  }
  0x3d   : > { %628 = vmatprep.mubr.bf16.mxu0 %v3242_v22  ;;  %2985 = vmatprep.subr.bf16.mxu0 %v3263_v21 }
  0x44   : > { %629 = vmatmul.mubr.bf16.gmra.mxu0 %v3244_v23  ;;  %v3264_v23 = vld [vmem:[%s4181_s3 + $0x98] sm:$0xff]  }
  0x45   : > { %2986 = vmatpush3.bf16.msra.mxu0 %v3264_v23 }
  0xec   : > { %v2931_v24 = vpop.f32.mrf.mxu0 }
  0xee   : > { %v2932_v26 = vpop.f32.mrf.mxu0 }
  0xef   : > { %v2933_v27 = vadd.f32 %v2932_v26, %v2931_v24 }
  0xf0   : > { %v2934_v28 = vpop.f32.mrf.mxu0 }
  0xf1   : > { %v3526_v29 = vadd.f32 %v2933_v27, %v2717_v25 }
  0xf2   : > { %v2935_v30 = vpop.f32.mrf.mxu0 }
  0xf3   : > { %v2936_v36 = vadd.f32 %v2935_v30, %v2934_v28  ;;  %v637_v28 = vmax.f32 %v3526_v29, 0.0 }
  0xf4   : > { %v2937_v31 = vpop.f32.mrf.mxu0 }
  0xf5   : > { %v610_v41 = vadd.f32 %v2936_v36, %v2717_v25 }
  0xf6   : > { %v2938_v32 = vpop.f32.mrf.mxu0 }
  0xf7   : > { %v2939_v43 = vadd.f32 %v2938_v32, %v2937_v31  ;;  %v638_v47 = vmax.f32 %v610_v41, 0.0  ;;  %v3265_v31 = vld [vmem:[%s4181_s3 + $0x50] sm:$0xff]  }
  0xf8   : > { %v2940_v33 = vpop.f32.mrf.mxu0  ;;  %2965 = vmatprep.subr.bf16.mxu1 %v3265_v31 }
  0xf9   : > { %v615_v49 = vadd.f32 %v2939_v43, %v2717_v25  ;;  %v3269_v43 = vld [vmem:[%s4181_s3 + $0x48] sm:$0xff]  }
  0xfa   : > { %v2941_v34 = vpop.f32.mrf.mxu0 }
  0xfb   : > { %v2942_v50 = vadd.f32 %v2941_v34, %v2940_v33  ;;  %v639_v57 = vmax.f32 %v615_v49, 0.0  ;;  %v3266_v33 = vld [vmem:[%s4181_s3 + $0x10] sm:$0xff]   ;;  %v3271_v49 = vld [vmem:[%s4181_s3 + $0xc8] sm:$0xff]  }
  0xfc   : > { %v2943_v35 = vpop.f32.mrf.mxu0  ;;  %v3267_v34 = vld [vmem:[%s4181_s3 + $0xd0] sm:$0xff]   ;;  %2966 = vmatpush3.bf16.msra.mxu1 %v3266_v33 }
  0xfd   : > { %v618_v58 = vadd.f32 %v2942_v50, %v2717_v25  ;;  %2987 = vmatprep.subr.bf16.mxu0 %v3267_v34  ;;  %2967 = vmatprep.subr.bf16.mxu1 %v3269_v43 }
  0xfe   : > { %v2944_v37 = vpop.f32.mrf.mxu0 }
  0xff   : > { %v2945_v38 = vadd.f32 %v2944_v37, %v2943_v35  ;;  %v640_v63 = vmax.f32 %v618_v58, 0.0 }
 0x100   : > { %v2946_v39 = vpop.f32.mrf.mxu0 }
 0x101   : > { %v3528_v40 = vadd.f32 %v2945_v38, %v2717_v25  ;;  %v3268_v38 = vld [vmem:[%s4181_s3 + $0x90] sm:$0xff]  }
 0x102   : > { %v2947_v42 = vpop.f32.mrf.mxu0  ;;  %2988 = vmatpush3.bf16.msra.mxu0 %v3268_v38 }
 0x103   : > { %v2948_v44 = vadd.f32 %v2947_v42, %v2946_v39  ;;  %v641_v30 = vmax.f32 %v3528_v40, 0.0  ;;  %2989 = vmatprep.subr.bf16.mxu0 %v3271_v49 }
 0x104   : > { %v2949_v45 = vpop.f32.mrf.mxu0 }
 0x105   : > { %v626_v46 = vadd.f32 %v2948_v44, %v2717_v25 }
 0x106   : > { %v2950_v48 = vpop.f32.mrf.mxu0 }
 0x107   : > { %v642_v51 = vmax.f32 %v626_v46, 0.0  ;;  %v2951_v52 = vadd.f32 %v2950_v48, %v2949_v45  ;;  %v3270_v48 = vld [vmem:[%s4181_s3 + $0x8] sm:$0xff]  }
 0x108   : > { %v2952_v53 = vpop.f32.mrf.mxu0  ;;  %2968 = vmatpush3.bf16.msra.mxu1 %v3270_v48 }
 0x109   : > { %v631_v54 = vadd.f32 %v2951_v52, %v2717_v25  ;;  %v3162_v55 = vpack.i.bf16 %v642_v51, %v638_v47  ;;  %v3272_v51 = vld [vmem:[%s4181_s3 + $0x88] sm:$0xff]   ;;  %v3273_v52 = vld [vmem:[%s4181_s3 + $0x40] sm:$0xff]  }
 0x10a   : > { %v2953_v56 = vpop.f32.mrf.mxu0  ;;  %2969 = vmatprep.subr.bf16.mxu1 %v3273_v52  ;;  %2990 = vmatpush3.bf16.msra.mxu0 %v3272_v51 }
 0x10b   : > { %v643_v59 = vmax.f32 %v631_v54, 0.0  ;;  %v2954_v60 = vadd.f32 %v2953_v56, %v2952_v53  ;;  %3163 = vrot.lane.b32.xlu0 %v3162_v55, %s3385_s25  ;;  %v3274_v56 = vld [vmem:[%s4181_s3] sm:$0xff]  }
 0x10c   : > { %2970 = vmatpush3.bf16.msra.mxu1 %v3274_v56 }
 0x10d   : > { %v634_v61 = vadd.f32 %v2954_v60, %v2717_v25  ;;  %v3167_v62 = vpack.i.bf16 %v643_v59, %v639_v57  ;;  %v3275_v60 = vld [vmem:[%s4181_s3 + $0xc0] sm:$0xff]  }
 0x10e   : > { %2991 = vmatprep.subr.bf16.mxu0 %v3275_v60 }
 0x10f   : > { %v644_v0 = vmax.f32 %v634_v61, 0.0  ;;  %3168 = vrot.lane.b32.xlu0 %v3167_v62, %s3386_s26  ;;  %v3276_v61 = vld [vmem:[%s4181_s3 + $0x80] sm:$0xff]  }
 0x110   : > { %2992 = vmatpush3.bf16.msra.mxu0 %v3276_v61 }
 0x111   : > { %v3172_v1 = vpack.i.bf16 %v644_v0, %v640_v63 }
 0x113   : > { %3173 = vrot.lane.b32.xlu1 %v3172_v1, %s3387_s27 }
 0x17d   : > { %v3164_v18 = vpop.permute.xlu0 %3163 }
 0x17e   : > { %v3166_v24 = vunpack.i.h.bf16 %v3164_v18  ;;  %v3165_v25 = vunpack.i.l.bf16 %v3164_v18 }
 0x180   : > { %v675_v35 = vsel %vm669_vm0, %v641_v30, %v3166_v24  ;;  %v670_v36 = vsel %vm669_vm0, %v637_v28, %v3165_v25 }
 0x181   : > { %v3169_v22 = vpop.permute.xlu0 %3168 }
 0x182   : > { %v3171_v26 = vunpack.i.h.bf16 %v3169_v22  ;;  %v3170_v27 = vunpack.i.l.bf16 %v3169_v22 }
 0x184   : > { %v672_v39 = vsel %vm671_vm1, %v670_v36, %v3170_v27  ;;  %v676_v40 = vsel %vm671_vm1, %v675_v35, %v3171_v26 }
 0x185   : > { %v3174_v32 = vpop.permute.xlu1 %3173 }
 0x186   : > { %v3176_v29 = vunpack.i.h.bf16 %v3174_v32  ;;  %v3175_v37 = vunpack.i.l.bf16 %v3174_v32 }
 0x188   : > { %v3607_v41 = vsel %vm673_vm2, %v672_v39, %v3175_v37  ;;  %v3609_v42 = vsel %vm673_vm2, %v676_v40, %v3176_v29 }
 0x189   : > { %v3177_v44 = vpack.i.bf16 %v3609_v42, %v3607_v41  ;;  %v3617_v45 = vrot.slane %v3607_v41, 7  ;;  %v3620_v46 = vrot.slane %v3609_v42, 7  ;;  %v3623_v47 = vrot.slane %v3607_v41, 2 }
 0x18a   : > { %v758_v50 = vrot.slane %v3609_v42, 2  ;;  %v3642_v54 = vrot.slane %v3607_v41, 1  ;;  %v742_v55 = vrot.slane %v3609_v42, 1  ;;  %v3651_v58 = vrot.slane %v3609_v42, 6 }
 0x18b   : > { %3178 = vrot.lane.b32.xlu1 %v3177_v44, %s3386_s26  ;;  %v3182_v53 = vpack.i.bf16 %v3620_v46, %v3617_v45  ;;  %v691_v59 = vrot.slane %v3607_v41, 6  ;;  %v3663_v63 = vrot.slane %v3609_v42, 5  ;;  %v701_v0 = vrot.slane %v3607_v41, 5 }
 0x18c   : > { %v3187_v57 = vpack.i.bf16 %v758_v50, %v3623_v47  ;;  %v3192_v62 = vpack.i.bf16 %v742_v55, %v3642_v54  ;;  %v756_v17 = vrot.slane %v3607_v41, 3  ;;  %v708_v60 = vrot.slane %v3609_v42, 4 }
 0x18d   : > { %3183 = vrot.lane.b32.xlu0 %v3182_v53, %s3386_s26  ;;  %v3197_v1 = vpack.i.bf16 %v3651_v58, %v691_v59  ;;  %v3202_v2 = vpack.i.bf16 %v3663_v63, %v701_v0 }
 0x18f   : > { %3188 = vrot.lane.b32.xlu1 %v3187_v57, %s3386_s26 }
 0x191   : > { %3193 = vrot.lane.b32.xlu0 %v3192_v62, %s3386_s26 }
 0x193   : > { %3198 = vrot.lane.b32.xlu1 %v3197_v1, %s3386_s26 }
 0x195   : > { %3203 = vrot.lane.b32.xlu0 %v3202_v2, %s3386_s26  ;;  %v3283_v2 = vld [vmem:[%s4183_s5 + $0xf0] sm:$0xff]  }
 0x1fd   : > { %v3179_v3 = vpop.permute.xlu1 %3178 }
 0x1fe   : > { %v3181_v4 = vunpack.i.h.bf16 %v3179_v3  ;;  %v3180_v5 = vunpack.i.l.bf16 %v3179_v3  ;;  %v3282_v3 = vld [vmem:[%s4183_s5 + $0x30] sm:$0xff]  }
 0x1ff   : > { %v3184_v6 = vpop.permute.xlu0 %3183 }
 0x200   : > { %v730_v7 = vsel %vm671_vm1, %v3180_v5, %v3181_v4  ;;  %v3186_v8 = vunpack.i.h.bf16 %v3184_v6  ;;  %v3185_v9 = vunpack.i.l.bf16 %v3184_v6  ;;  %v3284_v4 = vld [vmem:[%s4183_s5 + $0xb0] sm:$0xff]   ;;  %v3285_v5 = vld [vmem:[%s4183_s5 + $0x68] sm:$0xff]  }
 0x201   : > { %v733_v10 = vsel %vm710_vm3, %v3642_v54, %v730_v7  ;;  %v3189_v11 = vpop.permute.xlu1 %3188  ;;  %v3287_v6 = vld [vmem:[%s4183_s5 + $0xe8] sm:$0xff]  }
 0x202   : > { %v734_v12 = vsel %vm712_vm4, %v733_v10, %v3620_v46  ;;  %v686_v13 = vsel %vm671_vm1, %v3185_v9, %v3186_v8  ;;  %v3191_v14 = vunpack.i.h.bf16 %v3189_v11  ;;  %v3190_v15 = vunpack.i.l.bf16 %v3189_v11  ;;  %v3288_v8 = vld [vmem:[%s4183_s5 + $0xa8] sm:$0xff]   ;;  %v3289_v9 = vld [vmem:[%s4183_s5 + $0x60] sm:$0xff]  }
 0x203   : > { %v711_v16 = vsel %vm710_vm3, %v3607_v41, %v686_v13  ;;  %v3194_v18 = vpop.permute.xlu0 %3193  ;;  %v735_v19 = vsel %vm714_vm5, %v734_v12, %v3607_v41  ;;  %v3291_v10 = vld [vmem:[%s4183_s5 + $0xe0] sm:$0xff]  }
 0x204   : > { %v763_v20 = vsel %vm671_vm1, %v3190_v15, %v3191_v14  ;;  %v3196_v21 = vunpack.i.h.bf16 %v3194_v18  ;;  %v3195_v22 = vunpack.i.l.bf16 %v3194_v18  ;;  %v713_v23 = vsel %vm712_vm4, %v711_v16, %v3651_v58  ;;  %v3290_v11 = vld [vmem:[%s4183_s5 + $0x20] sm:$0xff]   ;;  %v3295_v14 = vld [vmem:[%s4183_s5 + $0xd8] sm:$0xff]   ;;  %v3299_v18 = vld [vmem:[%s4183_s5 + $0xd0] sm:$0xff]  }
 0x205   : > { %v766_v24 = vsel %vm710_vm3, %v756_v17, %v763_v20  ;;  %v3199_v25 = vpop.permute.xlu1 %3198  ;;  %v736_v26 = vsel %vm716_vm6, %v735_v19, %v686_v13  ;;  %v715_v35 = vsel %vm714_vm5, %v713_v23, %v3617_v45  ;;  %v3292_v12 = vld [vmem:[%s4183_s5 + $0xa0] sm:$0xff]   ;;  %v3294_v15 = vld [vmem:[%s4183_s5 + $0x18] sm:$0xff]   ;;  %v3297_v17 = vld [vmem:[%s4183_s5 + $0x50] sm:$0xff]  }
 0x206   : > { %v767_v27 = vsel %vm712_vm4, %v766_v24, %v742_v55  ;;  %v747_v28 = vsel %vm671_vm1, %v3195_v22, %v3196_v21  ;;  %v3201_v30 = vunpack.i.h.bf16 %v3199_v25  ;;  %v3200_v31 = vunpack.i.l.bf16 %v3199_v25  ;;  %v3296_v16 = vld [vmem:[%s4183_s5 + $0x98] sm:$0xff]   ;;  %v3298_v19 = vld [vmem:[%s4183_s5 + $0x10] sm:$0xff]   ;;  %v3301_v21 = vld [vmem:[%s4183_s5 + $0x48] sm:$0xff]  }
 0x207   : > { %v768_v32 = vsel %vm714_vm5, %v767_v27, %v3623_v47  ;;  %v749_v33 = vsel %vm710_vm3, %v3623_v47, %v747_v28  ;;  %v3204_v34 = vpop.permute.xlu0 %3203  ;;  %v737_v36 = vsel %vm718_vm7, %v736_v26, %v3651_v58  ;;  %v3300_v20 = vld [vmem:[%s4183_s5 + $0x90] sm:$0xff]   ;;  %v3303_v22 = vld [vmem:[%s4183_s5 + $0xc8] sm:$0xff]   ;;  %v2742_v27 = vld [vmem:[%s4182_s4] ss:$0 sm:$0xff] }
 0x208   : > { %v750_v29 = vsel %vm712_vm4, %v749_v33, %v3609_v42  ;;  %v769_v37 = vsel %vm716_vm6, %v768_v32, %v747_v28  ;;  %v3206_v38 = vunpack.i.h.bf16 %v3204_v34  ;;  %v3205_v39 = vunpack.i.l.bf16 %v3204_v34  ;;  %v3302_v23 = vld [vmem:[%s4183_s5 + $0x8] sm:$0xff]   ;;  %v3305_v33 = vld [vmem:[%s4183_s5 + $0x40] sm:$0xff]  }
 0x209   : > { %v751_v40 = vsel %vm714_vm5, %v750_v29, %v3642_v54  ;;  %v696_v43 = vsel %vm671_vm1, %v3200_v31, %v3201_v30  ;;  %v738_v44 = vsel %vm720_vm8, %v737_v36, %v3617_v45  ;;  %v770_v47 = vsel %vm718_vm7, %v769_v37, %v3609_v42  ;;  %v3277_v42 = vld [vmem:[%s4183_s5 + $0x78] sm:$0xff]   ;;  %v3304_v24 = vld [vmem:[%s4183_s5 + $0x88] sm:$0xff]   ;;  %v3307_v36 = vld [vmem:[%s4183_s5 + $0xc0] sm:$0xff]  }
 0x20a   : > { %v752_v48 = vsel %vm716_vm6, %v751_v40, %v730_v7  ;;  %v706_v49 = vsel %vm671_vm1, %v3205_v39, %v3206_v38  ;;  %v717_v50 = vsel %vm716_vm6, %v715_v35, %v696_v43  ;;  %v739_v51 = vsel %vm722_vm9, %v738_v44, %v696_v43  ;;  %2999 = vmatprep.subr.bf16.mxu1 %v3277_v42  ;;  %v3306_v35 = vld [vmem:[%s4183_s5] sm:$0xff]  }
 0x20b   : > { %v719_v52 = vsel %vm718_vm7, %v717_v50, %v3663_v63  ;;  %v753_v53 = vsel %vm718_vm7, %v752_v48, %v3620_v46  ;;  %v774_v55 = vpack.c.bf16 %v3663_v63, %v739_v51  ;;  %v771_v45 = vsel %vm720_vm8, %v770_v47, %v3642_v54  ;;  %v3308_v29 = vld [vmem:[%s4183_s5 + $0x80] sm:$0xff]  }
 0x20c   : > { %v754_v56 = vsel %vm720_vm8, %v753_v53, %v3607_v41  ;;  %v772_v57 = vsel %vm722_vm9, %v771_v45, %v730_v7  ;;  %v721_v61 = vsel %vm720_vm8, %v719_v52, %v691_v59  ;;  %v3278_v41 = vld [vmem:[%s4183_s5 + $0x38] sm:$0xff]   ;;  %v3281_v59 = vld [vmem:[%s4183_s5 + $0x70] sm:$0xff]   ;;  %v3286_v7 = vld [vmem:[%s4183_s5 + $0x28] sm:$0xff]   ;;  %v3388_v39 = vmov 0.0  }
 0x20d   : > { %v755_v62 = vsel %vm722_vm9, %v754_v56, %v686_v13  ;;  %1072 = vmatprep.mubr.bf16.mxu1 %v774_v55  ;;  %v776_v0 = vpack.c.bf16 %v3620_v46, %v772_v57  ;;  %v723_v63 = vsel %vm722_vm9, %v721_v61, %v706_v49  ;;  %v3279_v46 = vld [vmem:[%s4183_s5 + $0xf8] sm:$0xff]  }
 0x20e   : > { %v775_v54 = vpack.c.bf16 %v3651_v58, %v755_v62  ;;  %v773_v1 = vpack.c.bf16 %v708_v60, %v723_v63  ;;  %v3280_v58 = vld [vmem:[%s4183_s5 + $0xb8] sm:$0xff]   ;;  %3021 = vmatprep.subr.bf16.mxu0 %v3279_v46 }
 0x20f   : > { %1113 = vmatprep.mubr.bf16.mxu0 %v776_v0  ;;  %v3293_v13 = vld [vmem:[%s4183_s5 + $0x58] sm:$0xff]  }
 0x210   : > { %1073 = vmatmul.mubr.bf16.vlgmr.msra.gmra.mxu1 %v773_v1  ;;  %1114 = vmatmul.mubr.bf16.vlgmr.msra.gmra.mxu0 %v775_v54 }
 0x211   : > { %3000 = vmatpush3.bf16.msra.mxu1 %v3278_v41  ;;  %3022 = vmatpush3.bf16.msra.mxu0 %v3280_v58 }
 0x212   : > { %3001 = vmatprep.subr.bf16.mxu1 %v3281_v59  ;;  %3023 = vmatprep.subr.bf16.mxu0 %v3283_v2  ;;  %v3309_v2 = vld [vmem:[%s4183_s5 + $0x118] sm:$0xff]  }
 0x215   : > { %3002 = vmatpush3.bf16.msra.mxu1 %v3282_v3  ;;  %3024 = vmatpush3.bf16.msra.mxu0 %v3284_v4 }
 0x216   : > { %3003 = vmatprep.subr.bf16.mxu1 %v3285_v5  ;;  %3025 = vmatprep.subr.bf16.mxu0 %v3287_v6  ;;  %v3310_v5 = vld [vmem:[%s4183_s5 + $0x110] sm:$0xff]  }
 0x219   : > { %3004 = vmatpush3.bf16.msra.mxu1 %v3286_v7  ;;  %3026 = vmatpush3.bf16.msra.mxu0 %v3288_v8  ;;  %v3311_v8 = vld [vmem:[%s4183_s5 + $0x108] sm:$0xff]  }
 0x21a   : > { %3005 = vmatprep.subr.bf16.mxu1 %v3289_v9  ;;  %3027 = vmatprep.subr.bf16.mxu0 %v3291_v10  ;;  %v3312_v10 = vld [vmem:[%s4183_s5 + $0x100] sm:$0xff]  }
 0x21d   : > { %3006 = vmatpush3.bf16.msra.mxu1 %v3290_v11  ;;  %3028 = vmatpush3.bf16.msra.mxu0 %v3292_v12 }
 0x21e   : > { %3007 = vmatprep.subr.bf16.mxu1 %v3293_v13  ;;  %3029 = vmatprep.subr.bf16.mxu0 %v3295_v14  ;;  %v1594_v13 = vld [vmem:[%s4185_s7 + $0xc0] sm:$0xff] }
 0x21f   : > { %v1598_v14 = vld [vmem:[%s4185_s7 + $0xe0] sm:$0xff] }
 0x221   : > { %3008 = vmatpush3.bf16.msra.mxu1 %v3294_v15  ;;  %3030 = vmatpush3.bf16.msra.mxu0 %v3296_v16  ;;  %v1595_v15 = vld [vmem:[%s4185_s7 + $0xc8] sm:$0xff]  ;;  %v2836_v16 = vcombine.low %v1594_v13, %v1598_v14 }
 0x222   : > { %3009 = vmatprep.subr.bf16.mxu1 %v3297_v17  ;;  %3031 = vmatprep.subr.bf16.mxu0 %v3299_v18  ;;  %v2837_v17 = vcombine.high %v1594_v13, %v1598_v14  ;;  %v1599_v18 = vld [vmem:[%s4185_s7 + $0xe8] sm:$0xff] }
 0x225   : > { %3010 = vmatpush3.bf16.msra.mxu1 %v3298_v19  ;;  %3032 = vmatpush3.bf16.msra.mxu0 %v3300_v20  ;;  %v2838_v19 = vcombine.low %v1595_v15, %v1599_v18  ;;  %v2839_v20 = vcombine.high %v1595_v15, %v1599_v18  ;;  %v1580_v15 = vld [vmem:[%s4185_s7 + $0x50] sm:$0xff]  ;;  %v1581_v18 = vld [vmem:[%s4185_s7 + $0x58] sm:$0xff] }
 0x226   : > { %3011 = vmatprep.subr.bf16.mxu1 %v3301_v21  ;;  %3033 = vmatprep.subr.bf16.mxu0 %v3303_v22  ;;  %v1586_v21 = vld [vmem:[%s4185_s7 + $0x80] sm:$0xff] }
 0x227   : > { %v1590_v22 = vld [vmem:[%s4185_s7 + $0xa0] sm:$0xff] }
 0x229   : > { %3012 = vmatpush3.bf16.msra.mxu1 %v3302_v23  ;;  %3034 = vmatpush3.bf16.msra.mxu0 %v3304_v24  ;;  %v1587_v23 = vld [vmem:[%s4185_s7 + $0x88] sm:$0xff]  ;;  %v2829_v24 = vcombine.high %v1586_v21, %v1590_v22 }
 0x22a   : > { %3013 = vmatprep.subr.bf16.mxu1 %v3305_v33  ;;  %3035 = vmatprep.subr.bf16.mxu0 %v3307_v36 }
 0x22d   : > { %3014 = vmatpush3.bf16.msra.mxu1 %v3306_v35  ;;  %3036 = vmatpush3.bf16.msra.mxu0 %v3308_v29 }
 0x22e   : > { %3136 = vmatprep.subr.bf16.mxu1 %v3388_v39  ;;  %1856 = vmatprep.subr.bf16.mxu0 %v2839_v20 }
 0x2d0   : > { %v2971_v25 = vpop.f32.mrf.mxu1  ;;  %v2993_v26 = vpop.f32.mrf.mxu0 }
 0x2d2   : > { %v2972_v28 = vpop.f32.mrf.mxu1  ;;  %v2994_v30 = vpop.f32.mrf.mxu0 }
 0x2d3   : > { %v2973_v31 = vadd.f32 %v2972_v28, %v2971_v25  ;;  %v2995_v32 = vadd.f32 %v2994_v30, %v2993_v26  ;;  %v1591_v25 = vld [vmem:[%s4185_s7 + $0xa8] sm:$0xff]  ;;  %v1578_v26 = vld [vmem:[%s4185_s7 + $0x40] sm:$0xff]  ;;  %v2828_v28 = vcombine.low %v1586_v21, %v1590_v22 }
 0x2d4   : > { %v2974_v50 = vpop.f32.mrf.mxu1  ;;  %v2996_v62 = vpop.f32.mrf.mxu0  ;;  %v2831_v30 = vcombine.high %v1587_v23, %v1591_v25  ;;  %v2830_v33 = vcombine.low %v1587_v23, %v1591_v25  ;;  %v1576_v25 = vld [vmem:[%s4185_s7 + $0x30] sm:$0xff] }
 0x2d5   : > { %v1075_v34 = vadd.f32 %v2973_v31, %v2742_v27  ;;  %v1579_v31 = vld [vmem:[%s4185_s7 + $0x48] sm:$0xff] }
 0x2d6   : > { %v2975_v0 = vpop.f32.mrf.mxu1  ;;  %v2997_v4 = vpop.f32.mrf.mxu0 }
 0x2d7   : > { %v1116_v37 = vadd.f32 %v2995_v32, %v1075_v34  ;;  %v2976_v3 = vadd.f32 %v2975_v0, %v2974_v50  ;;  %v2998_v7 = vadd.f32 %v2997_v4, %v2996_v62  ;;  %v1583_v32 = vld [vmem:[%s4185_s7 + $0x68] sm:$0xff]  ;;  %v1600_v50 = vld [vmem:[%s4185_s7 + $0xf0] sm:$0xff] }
 0x2d8   : > { %v2823_v35 = vcombine.high %v1579_v31, %v1583_v32  ;;  %v2822_v29 = vcombine.low %v1579_v31, %v1583_v32 }
 0x2d9   : > { %v1122_v38 = vmax.f32 %v1116_v37, 0.0  ;;  %v1078_v6 = vadd.f32 %v2976_v3, %v2742_v27  ;;  %v1582_v27 = vld [vmem:[%s4185_s7 + $0x60] sm:$0xff] }
 0x2da   : > { %v2821_v34 = vcombine.high %v1578_v26, %v1582_v27  ;;  %v2820_v36 = vcombine.low %v1578_v26, %v1582_v27  ;;  %v1570_v37 = vld [vmem:[%s4185_s7] sm:$0xff]  ;;  %v1573_v26 = vld [vmem:[%s4185_s7 + $0x18] sm:$0xff] }
 0x2db   : > { %v1137_v40 = vrot.slane %v1122_v38, 5  ;;  %v1143_v43 = vrot.slane %v1122_v38, 7  ;;  %v1125_v44 = vrot.slane %v1122_v38, 1  ;;  %v1131_v47 = vrot.slane %v1122_v38, 3  ;;  %v1577_v27 = vld [vmem:[%s4185_s7 + $0x38] sm:$0xff] }
 0x2dc   : > { %v1135_v55 = vrot.slane %v1122_v38, 4  ;;  %v1141_v56 = vrot.slane %v1122_v38, 6  ;;  %v1129_v61 = vrot.slane %v1122_v38, 2  ;;  %v1119_v9 = vadd.f32 %v2998_v7, %v1078_v6  ;;  %v1592_v7 = vld [vmem:[%s4185_s7 + $0xb0] sm:$0xff] }
 0x2dd   : > { %v3212_v48 = vpack.i.bf16 %v1137_v40, %v1143_v43  ;;  %v3207_v49 = vpack.i.bf16 %v1125_v44, %v1131_v47  ;;  %v1575_v43 = vld [vmem:[%s4185_s7 + $0x28] sm:$0xff]  ;;  %v2819_v32 = vcombine.high %v1573_v26, %v1577_v27 }
 0x2de   : > { %v1123_v11 = vmax.f32 %v1119_v9, 0.0  ;;  %v1593_v9 = vld [vmem:[%s4185_s7 + $0xb8] sm:$0xff] }
 0x2df   : > { %3213 = vrot.lane.b32.xlu0 %v3212_v48, %s3386_s26  ;;  %3208 = vrot.lane.b32.xlu1 %v3207_v49, %s3386_s26  ;;  %v1596_v49 = vld [vmem:[%s4185_s7 + $0xd0] sm:$0xff] }
 0x2e0   : > { %v1155_v12 = vpack.c.bf16 %v1123_v11, %v1123_v11 }
 0x351   : > { %v3214_v51 = vpop.permute.xlu0 %3213  ;;  %v3209_v45 = vpop.permute.xlu1 %3208 }
 0x352   : > { %v3216_v52 = vunpack.i.h.bf16 %v3214_v51  ;;  %v3215_v53 = vunpack.i.l.bf16 %v3214_v51  ;;  %v3211_v57 = vunpack.i.h.bf16 %v3209_v45  ;;  %v3210_v60 = vunpack.i.l.bf16 %v3209_v45  ;;  %v1597_v51 = vld [vmem:[%s4185_s7 + $0xd8] sm:$0xff] }
 0x354   : > { %v1149_v63 = vsel %vm671_vm1, %v1135_v55, %v3216_v52  ;;  %v1150_v54 = vsel %vm671_vm1, %v1141_v56, %v3215_v53  ;;  %v1147_v42 = vsel %vm671_vm1, %v1122_v38, %v3211_v57  ;;  %v1148_v41 = vsel %vm671_vm1, %v1129_v61, %v3210_v60  ;;  %v1574_v38 = vld [vmem:[%s4185_s7 + $0x20] sm:$0xff]  ;;  %v1601_v53 = vld [vmem:[%s4185_s7 + $0xf8] sm:$0xff] }
 0x355   : > { %v1153_v1 = vpack.c.bf16 %v1149_v63, %v1149_v63  ;;  %v1154_v46 = vpack.c.bf16 %v1150_v54, %v1150_v54  ;;  %v1151_v58 = vpack.c.bf16 %v1147_v42, %v1147_v42  ;;  %v1152_v59 = vpack.c.bf16 %v1148_v41, %v1148_v41 }
 0x356   : > { %v2813_v40 = vcombine.high %v1570_v37, %v1574_v38  ;;  %v2812_v44 = vcombine.low %v1570_v37, %v1574_v38  ;;  %v2841_v52 = vcombine.high %v1596_v49, %v1600_v50  ;;  %v2840_v55 = vcombine.low %v1596_v49, %v1600_v50  ;;  %v3316_v37 = vld [vmem:[%s4187_s9 + $0xb8] sm:$0xff]   ;;  %v3317_v38 = vld [vmem:[%s4187_s9 + $0x70] sm:$0xff]   ;;  %v3324_v49 = vld [vmem:[%s4187_s9 + $0xa8] sm:$0xff]  }
 0x357   : > { %1520 = vmatprep.mubr.bf16.mxu0 %v1154_v46  ;;  %1480 = vmatprep.mubr.bf16.mxu1 %v1152_v59  ;;  %v2842_v45 = vcombine.low %v1597_v51, %v1601_v53  ;;  %v2843_v56 = vcombine.high %v1597_v51, %v1601_v53  ;;  %v3390_v57 = vmov 0   ;;  %v1228_v46 = vld [vmem:[%s4184_s6] sm:$0x1] }
 0x358   : > { %1521 = vmatmul.mubr.bf16.vlgmr.msra.gmra.mxu0 %v1153_v1  ;;  %1481 = vmatmul.mubr.bf16.vlgmr.msra.gmra.mxu1 %v1151_v58  ;;  %v3325_v50 = vld [vmem:[%s4187_s9 + $0x60] sm:$0xff]  }
 0x359   : > { %3137 = vmatpush3.bf16.msra.mxu1 %v3309_v2  ;;  %3144 = vmatprep.mubr.msk.bf16.mxu1 %vm3389_vm10, %v3388_v39  ;;  %v3326_v51 = vld [vmem:[%s4187_s9 + $0xe0] sm:$0xff]  }
 0x35a   : > { %3138 = vmatprep.subr.bf16.mxu1 %v3388_v39  ;;  %1857 = vmatpush1.bf16.msra.mxu0 %v2838_v19  ;;  %v1585_v19 = vld [vmem:[%s4185_s7 + $0x78] sm:$0xff]  ;;  %v3328_v53 = vld [vmem:[%s4187_s9 + $0xa0] sm:$0xff]  }
 0x35b   : > { %1858 = vmatprep.subr.bf16.mxu0 %v2831_v30  ;;  %1880 = vmatprep.mubr.bf16.mxu0 %v3390_v57  ;;  %v2827_v23 = vcombine.high %v1581_v18, %v1585_v19  ;;  %v2826_v30 = vcombine.low %v1581_v18, %v1585_v19 }
 0x35d   : > { %3139 = vmatpush3.bf16.msra.mxu1 %v3310_v5  ;;  %v1588_v5 = vld [vmem:[%s4185_s7 + $0x90] sm:$0xff] }
 0x35e   : > { %3140 = vmatprep.subr.bf16.mxu1 %v3388_v39  ;;  %1859 = vmatpush1.bf16.msra.mxu0 %v2830_v33  ;;  %v2833_v13 = vcombine.high %v1588_v5, %v1592_v7  ;;  %v2832_v20 = vcombine.low %v1588_v5, %v1592_v7 }
 0x35f   : > { %1860 = vmatprep.subr.bf16.mxu0 %v2823_v35  ;;  %v3313_v35 = vld [vmem:[%s4187_s9 + $0x78] sm:$0xff]  }
 0x361   : > { %3141 = vmatpush3.bf16.msra.mxu1 %v3311_v8  ;;  %v1589_v8 = vld [vmem:[%s4185_s7 + $0x98] sm:$0xff] }
 0x362   : > { %3142 = vmatprep.subr.bf16.mxu1 %v3388_v39  ;;  %v1571_v39 = vld [vmem:[%s4185_s7 + $0x8] sm:$0xff]  ;;  %1861 = vmatpush1.bf16.msra.mxu0 %v2822_v29  ;;  %v2835_v14 = vcombine.high %v1589_v8, %v1593_v9  ;;  %v2834_v21 = vcombine.low %v1589_v8, %v1593_v9  ;;  %v3315_v29 = vld [vmem:[%s4187_s9 + $0x38] sm:$0xff]   ;;  %v4061_v8 = vld [vmem:[%s4186_s8] sm:$0xff] }
 0x363   : > { %v2814_v47 = vcombine.low %v1571_v39, %v1575_v43  ;;  %v2815_v48 = vcombine.high %v1571_v39, %v1575_v43  ;;  %v3318_v39 = vld [vmem:[%s4187_s9 + $0xf0] sm:$0xff]  }
 0x364   : > { %v3320_v43 = vld [vmem:[%s4187_s9 + $0xb0] sm:$0xff]  }
 0x365   : > { %3143 = vmatpush3.bf16.msra.mxu1 %v3312_v10  ;;  %1862 = vmatprep.subr.bf16.mxu0 %v2815_v48  ;;  %v3323_v48 = vld [vmem:[%s4187_s9 + $0x28] sm:$0xff]  }
 0x366   : > { %1815 = vmatprep.subr.bf16.mxu1 %v2837_v17  ;;  %1863 = vmatpush1.bf16.msra.mxu0 %v2814_v47  ;;  %v1584_v17 = vld [vmem:[%s4185_s7 + $0x70] sm:$0xff]  ;;  %v3322_v47 = vld [vmem:[%s4187_s9 + $0xe8] sm:$0xff]  }
 0x367   : > { %1938 = vmatprep.subr.bf16.mxu0 %v2843_v56  ;;  %v2825_v22 = vcombine.high %v1580_v15, %v1584_v17  ;;  %v3331_v56 = vld [vmem:[%s4187_s9 + $0x18] sm:$0xff]  }
 0x368   : > { %3145 = vmatmul.mubr.msk.bf16.vlgmr.msra.gmra.mxu1 %vm671_vm1, %v1155_v12 }
 0x369   : > { %1816 = vmatpush1.bf16.msra.mxu1 %v2836_v16  ;;  %1839 = vmatprep.mubr.bf16.mxu1 %v3390_v57 }
 0x36a   : > { %1817 = vmatprep.subr.bf16.mxu1 %v2829_v24  ;;  %v1572_v24 = vld [vmem:[%s4185_s7 + $0x10] sm:$0xff] }
 0x36b   : > { %v2817_v31 = vcombine.high %v1572_v24, %v1576_v25  ;;  %v2816_v33 = vcombine.low %v1572_v24, %v1576_v25 }
 0x36d   : > { %1818 = vmatpush1.bf16.msra.mxu1 %v2828_v28  ;;  %v2824_v28 = vcombine.low %v1580_v15, %v1584_v17 }
 0x36e   : > { %1819 = vmatprep.subr.bf16.mxu1 %v2821_v34  ;;  %v2818_v34 = vcombine.low %v1573_v26, %v1577_v27 }
 0x371   : > { %1820 = vmatpush1.bf16.msra.mxu1 %v2820_v36  ;;  %v3314_v36 = vld [vmem:[%s4187_s9 + $0xf8] sm:$0xff]  }
 0x372   : > { %1821 = vmatprep.subr.bf16.mxu1 %v2813_v40  ;;  %v3319_v40 = vld [vmem:[%s4187_s9 + $0x30] sm:$0xff]  }
 0x375   : > { %1822 = vmatpush1.bf16.msra.mxu1 %v2812_v44  ;;  %v3321_v44 = vld [vmem:[%s4187_s9 + $0x68] sm:$0xff]  }
 0x376   : > { %1897 = vmatprep.subr.bf16.mxu1 %v2841_v52  ;;  %v3327_v52 = vld [vmem:[%s4187_s9 + $0x20] sm:$0xff]  }
 0x418   : > { %v3037_v60 = vpop.f32.mrf.mxu0  ;;  %v3015_v61 = vpop.f32.mrf.mxu1 }
 0x41a   : > { %v3038_v62 = vpop.f32.mrf.mxu0  ;;  %v3016_v0 = vpop.f32.mrf.mxu1 }
 0x41b   : > { %v3017_v41 = vadd.f32 %v3016_v0, %v3015_v61  ;;  %v3039_v59 = vadd.f32 %v3038_v62, %v3037_v60  ;;  %v3333_v60 = vld [vmem:[%s4187_s9 + $0x50] sm:$0xff]  }
 0x41c   : > { %v3040_v63 = vpop.f32.mrf.mxu0  ;;  %v3018_v54 = vpop.f32.mrf.mxu1  ;;  %v3334_v61 = vld [vmem:[%s4187_s9 + $0xd0] sm:$0xff]  }
 0x41d   : > { %v1483_v58 = vadd.f32 %v3017_v41, %v1228_v46  ;;  %v3335_v62 = vld [vmem:[%s4187_s9 + $0x10] sm:$0xff]   ;;  %v3337_v63 = vld [vmem:[%s4187_s9 + $0x48] sm:$0xff]   ;;  %v3341_v41 = vld [vmem:[%s4187_s9 + $0x40] sm:$0xff]  }
 0x41e   : > { %v3041_v1 = vpop.f32.mrf.mxu0  ;;  %v3019_v42 = vpop.f32.mrf.mxu1  ;;  %v3336_v0 = vld [vmem:[%s4187_s9 + $0x90] sm:$0xff]   ;;  %v3338_v54 = vld [vmem:[%s4187_s9 + $0xc8] sm:$0xff]   ;;  %v3342_v46 = vld [vmem:[%s4187_s9 + $0xc0] sm:$0xff]  }
 0x41f   : > { %v1523_v2 = vadd.f32 %v3039_v59, %v1483_v58  ;;  %v3339_v1 = vld [vmem:[%s4187_s9 + $0x8] sm:$0xff]   ;;  %v3343_v58 = vld [vmem:[%s4187_s9] sm:$0xff]  }
 0x420   : > { %v3340_v42 = vld [vmem:[%s4187_s9 + $0x88] sm:$0xff]   ;;  %v3344_v59 = vld [vmem:[%s4187_s9 + $0x80] sm:$0xff]  }
 0x428   : > { %v1562_v3 = vpop.f32.mrf.mxu1 }
 0x429   : > { %v1563_v4 = vadd.f32 %v1562_v3, %v1523_v2  ;;  %v3345_v2 = vld [vmem:[%s4187_s9 + $0x178] sm:$0xff]  }
 0x42a   : > { %v3146_v6 = vpop.f32.mrf.mxu1  ;;  %v3346_v3 = vld [vmem:[%s4187_s9 + $0x1f8] sm:$0xff]  }
 0x42b   : > { %v1568_v10 = vmax.f32 %v1563_v4, 0.0  ;;  %v1764_v4 = vlaneseq }
 0x42c   : > { %v1565_v11 = vpop.f32.mrf.mxu1 }
 0x42d   : > { %v1569_v12 = vpack.c.bf16 %v1568_v10, %v1568_v10  ;;  %v4054_v5 = vshrl.u32 %v1764_v4, 7 }
 0x42e   : > { %v3147_v16 = vpop.f32.mrf.mxu1 }
 0x42f   : > { %2844 = vmatmul.mubr.msk.bf16.vlgmr.msra.gmra.mxu1 %vm671_vm1, %v1569_v12  ;;  %2845 = vmatmul.mubr.msk.bf16.vlgmr.msra.gmra.mxu0 %vm671_vm1, %v1569_v12  ;;  %v1766_v6 = vsub.s32 0, %v4054_v5  ;;  %v1774_v7 = vsub.s32 2, %v4054_v5  ;;  %v1770_v9 = vsub.s32 1, %v4054_v5  ;;  %v1778_v10 = vsub.s32 3, %v4054_v5 }
 0x430   : > { %1898 = vmatpush1.bf16.msra.mxu1 %v2840_v55  ;;  %1939 = vmatpush1.bf16.msra.mxu0 %v2842_v45  ;;  %v3329_v55 = vld [vmem:[%s4187_s9 + $0x58] sm:$0xff]  }
 0x431   : > { %1899 = vmatprep.subr.bf16.mxu1 %v2833_v13  ;;  %1940 = vmatprep.subr.bf16.mxu0 %v2835_v14  ;;  %v3330_v45 = vld [vmem:[%s4187_s9 + $0xd8] sm:$0xff]   ;;  %v1767_v11 = vrot.slane %v4061_v8, %v1766_v6  ;;  %v1771_v13 = vrot.slane %v4061_v8, %v1770_v9  ;;  %v1779_v14 = vrot.slane %v4061_v8, %v1778_v10  ;;  %v1782_v9 = vsub.s32 4, %v4054_v5 }
 0x432   : > { %1921 = vmatprep.mubr.bf16.mxu1 %v3390_v57  ;;  %1962 = vmatprep.mubr.bf16.mxu0 %v3390_v57  ;;  %v3332_v57 = vld [vmem:[%s4187_s9 + $0x98] sm:$0xff]   ;;  %v1790_v10 = vsub.s32 6, %v4054_v5 }
 0x433   : > { %v3363_v6 = vld [vmem:[%s4187_s9 + $0x118] sm:$0xff]  }
 0x434   : > { %1900 = vmatpush1.bf16.msra.mxu1 %v2832_v20  ;;  %1941 = vmatpush1.bf16.msra.mxu0 %v2834_v21 }
 0x435   : > { %1901 = vmatprep.subr.bf16.mxu1 %v2825_v22  ;;  %1942 = vmatprep.subr.bf16.mxu0 %v2827_v23 }
 0x438   : > { %1902 = vmatpush1.bf16.msra.mxu1 %v2824_v28  ;;  %1943 = vmatpush1.bf16.msra.mxu0 %v2826_v30 }
 0x439   : > { %1903 = vmatprep.subr.bf16.mxu1 %v2817_v31  ;;  %1944 = vmatprep.subr.bf16.mxu0 %v2819_v32 }
 0x43c   : > { %1904 = vmatpush1.bf16.msra.mxu1 %v2816_v33  ;;  %1945 = vmatpush1.bf16.msra.mxu0 %v2818_v34  ;;  %v3347_v34 = vld [vmem:[%s4187_s9 + $0x138] sm:$0xff]  }
 0x43d   : > { %3048 = vmatprep.subr.bf16.mxu1 %v3313_v35  ;;  %3070 = vmatprep.subr.bf16.mxu0 %v3314_v36  ;;  %v3348_v35 = vld [vmem:[%s4187_s9 + $0x1b8] sm:$0xff]  }
 0x43f   : > { %2846 = vmatmul.mubr.msk.bf16.vlgmr.msra.gmra.mxu1 %vm671_vm1, %v1569_v12  ;;  %2847 = vmatmul.mubr.msk.bf16.vlgmr.msra.gmra.mxu0 %vm671_vm1, %v1569_v12  ;;  %v1775_v12 = vrot.slane %v4061_v8, %v1774_v7  ;;  %v3364_v7 = vld [vmem:[%s4187_s9 + $0x198] sm:$0xff]  }
 0x440   : > { %3049 = vmatpush3.bf16.msra.mxu1 %v3315_v29  ;;  %3071 = vmatpush3.bf16.msra.mxu0 %v3316_v37  ;;  %v3349_v37 = vld [vmem:[%s4187_s9 + $0x170] sm:$0xff]  }
 0x441   : > { %3050 = vmatprep.subr.bf16.mxu1 %v3317_v38  ;;  %3072 = vmatprep.subr.bf16.mxu0 %v3318_v39  ;;  %v3350_v38 = vld [vmem:[%s4187_s9 + $0x1f0] sm:$0xff]  }
 0x442   : > { %v3351_v39 = vld [vmem:[%s4187_s9 + $0x130] sm:$0xff]  }
 0x444   : > { %3051 = vmatpush3.bf16.msra.mxu1 %v3319_v40  ;;  %3073 = vmatpush3.bf16.msra.mxu0 %v3320_v43  ;;  %v3352_v40 = vld [vmem:[%s4187_s9 + $0x1b0] sm:$0xff]   ;;  %v1786_v43 = vsub.s32 5, %v4054_v5 }
 0x445   : > { %3052 = vmatprep.subr.bf16.mxu1 %v3321_v44  ;;  %3074 = vmatprep.subr.bf16.mxu0 %v3322_v47  ;;  %v1794_v44 = vsub.s32 7, %v4054_v5  ;;  %v3353_v47 = vld [vmem:[%s4187_s9 + $0x168] sm:$0xff]   ;;  %v3368_v5 = vld [vmem:[%s4187_s9 + $0x190] sm:$0xff]  }
 0x448   : > { %3053 = vmatpush3.bf16.msra.mxu1 %v3323_v48  ;;  %3075 = vmatpush3.bf16.msra.mxu0 %v3324_v49  ;;  %v3354_v48 = vld [vmem:[%s4187_s9 + $0x1e8] sm:$0xff]   ;;  %v1787_v49 = vrot.slane %v4061_v8, %v1786_v43 }
 0x449   : > { %3054 = vmatprep.subr.bf16.mxu1 %v3325_v50  ;;  %3076 = vmatprep.subr.bf16.mxu0 %v3326_v51  ;;  %v1795_v50 = vrot.slane %v4061_v8, %v1794_v44  ;;  %v3355_v51 = vld [vmem:[%s4187_s9 + $0x128] sm:$0xff]  }
 0x44c   : > { %3055 = vmatpush3.bf16.msra.mxu1 %v3327_v52  ;;  %3077 = vmatpush3.bf16.msra.mxu0 %v3328_v53  ;;  %v3356_v52 = vld [vmem:[%s4187_s9 + $0x1a8] sm:$0xff]  }
 0x44d   : > { %3056 = vmatprep.subr.bf16.mxu1 %v3329_v55  ;;  %3078 = vmatprep.subr.bf16.mxu0 %v3330_v45  ;;  %v3357_v45 = vld [vmem:[%s4187_s9 + $0x160] sm:$0xff]  }
 0x450   : > { %3057 = vmatpush3.bf16.msra.mxu1 %v3331_v56  ;;  %3079 = vmatpush3.bf16.msra.mxu0 %v3332_v57  ;;  %v3358_v56 = vld [vmem:[%s4187_s9 + $0x1e0] sm:$0xff]  }
 0x451   : > { %3058 = vmatprep.subr.bf16.mxu1 %v3333_v60  ;;  %3080 = vmatprep.subr.bf16.mxu0 %v3334_v61 }
 0x454   : > { %3059 = vmatpush3.bf16.msra.mxu1 %v3335_v62  ;;  %3081 = vmatpush3.bf16.msra.mxu0 %v3336_v0  ;;  %v3359_v0 = vld [vmem:[%s4187_s9 + $0x120] sm:$0xff]  }
 0x455   : > { %3060 = vmatprep.subr.bf16.mxu1 %v3337_v63  ;;  %3082 = vmatprep.subr.bf16.mxu0 %v3338_v54  ;;  %v3360_v63 = vld [vmem:[%s4187_s9 + $0x1a0] sm:$0xff]  }
 0x458   : > { %3061 = vmatpush3.bf16.msra.mxu1 %v3339_v1  ;;  %3083 = vmatpush3.bf16.msra.mxu0 %v3340_v42  ;;  %v3361_v42 = vld [vmem:[%s4187_s9 + $0x158] sm:$0xff]  }
 0x459   : > { %3062 = vmatprep.subr.bf16.mxu1 %v3341_v41  ;;  %3084 = vmatprep.subr.bf16.mxu0 %v3342_v46  ;;  %v3362_v41 = vld [vmem:[%s4187_s9 + $0x1d8] sm:$0xff]  }
 0x45c   : > { %3063 = vmatpush3.bf16.msra.mxu1 %v3343_v58  ;;  %3085 = vmatpush3.bf16.msra.mxu0 %v3344_v59 }
 0x45d   : > { %3092 = vmatprep.subr.bf16.mxu1 %v3345_v2  ;;  %3114 = vmatprep.subr.bf16.mxu0 %v3346_v3 }
 0x4ef   : > { %v1841_v15 = vpop.f32.mrf.mxu1  ;;  %v1882_v16 = vpop.f32.mrf.mxu0 }
 0x4f0   : > { %v1842_v17 = vadd.f32 %v1841_v15, %v1767_v11  ;;  %v1883_v18 = vadd.f32 %v1882_v16, %v1775_v12  ;;  %v3365_v11 = vld [vmem:[%s4187_s9 + $0x150] sm:$0xff]   ;;  %v1791_v15 = vrot.slane %v4061_v8, %v1790_v10  ;;  %v3369_v16 = vld [vmem:[%s4187_s9 + $0x148] sm:$0xff]  }
 0x4f1   : > { %v1843_v19 = vpop.f32.mrf.mxu1  ;;  %v1884_v20 = vpop.f32.mrf.mxu0  ;;  %v3366_v12 = vld [vmem:[%s4187_s9 + $0x1d0] sm:$0xff]  }
 0x4f2   : > { %v1844_v21 = vadd.f32 %v1843_v19, %v1771_v13  ;;  %v1885_v22 = vadd.f32 %v1884_v20, %v1779_v14  ;;  %v1971_v23 = vmax.f32 %v1842_v17, 0.0  ;;  %v1973_v24 = vmax.f32 %v1883_v18, 0.0  ;;  %v3367_v13 = vld [vmem:[%s4187_s9 + $0x110] sm:$0xff]   ;;  %v3370_v17 = vld [vmem:[%s4187_s9 + $0x1c8] sm:$0xff]  }
 0x4f3   : > { %v1845_v25 = vpop.f32.mrf.mxu1  ;;  %v1886_v26 = vpop.f32.mrf.mxu0  ;;  %v1783_v14 = vrot.slane %v4061_v8, %v1782_v9  ;;  %v3371_v18 = vld [vmem:[%s4187_s9 + $0x108] sm:$0xff]  }
 0x4f4   : > { %v1972_v27 = vmax.f32 %v1844_v21, 0.0  ;;  %v1974_v28 = vmax.f32 %v1885_v22, 0.0  ;;  %v1979_v36 = vpack.c.bf16 %v1971_v23, %v1971_v23  ;;  %v1981_v29 = vpack.c.bf16 %v1973_v24, %v1973_v24  ;;  %v3372_v8 = vld [vmem:[%s4187_s9 + $0x188] sm:$0xff]   ;;  %v3373_v21 = vld [vmem:[%s4187_s9 + $0x140] sm:$0xff]  }
 0x4f5   : > { %v1846_v30 = vpop.f32.mrf.mxu1  ;;  %v1887_v31 = vpop.f32.mrf.mxu0  ;;  %v3374_v22 = vld [vmem:[%s4187_s9 + $0x1c0] sm:$0xff]  }
 0x4f6   : > { %v1980_v32 = vpack.c.bf16 %v1972_v27, %v1972_v27  ;;  %v1982_v33 = vpack.c.bf16 %v1974_v28, %v1974_v28  ;;  %v3375_v23 = vld [vmem:[%s4187_s9 + $0x100] sm:$0xff]  }
 0x4f7   : > { %v3376_v24 = vld [vmem:[%s4187_s9 + $0x180] sm:$0xff]  }
 0x4f8   : > { %2532 = vmatprep.mubr.bf16.mxu1 %v1980_v32  ;;  %2572 = vmatprep.mubr.bf16.mxu0 %v1982_v33 }
 0x4f9   : > { %2533 = vmatmul.mubr.bf16.vlgmr.msra.gmra.mxu1 %v1979_v36  ;;  %2573 = vmatmul.mubr.bf16.vlgmr.msra.gmra.mxu0 %v1981_v29 }
 0x4fa   : > { %3093 = vmatpush3.bf16.msra.mxu1 %v3347_v34  ;;  %3115 = vmatpush3.bf16.msra.mxu0 %v3348_v35 }
 0x4fb   : > { %3094 = vmatprep.subr.bf16.mxu1 %v3349_v37  ;;  %3116 = vmatprep.subr.bf16.mxu0 %v3350_v38  ;;  %v2115_v38 = vld [vmem:[%s4188_s10] sm:$0x1] }
 0x4fe   : > { %3095 = vmatpush3.bf16.msra.mxu1 %v3351_v39  ;;  %3117 = vmatpush3.bf16.msra.mxu0 %v3352_v40 }
 0x4ff   : > { %v1923_v53 = vpop.f32.mrf.mxu1  ;;  %v1964_v55 = vpop.f32.mrf.mxu0  ;;  %3096 = vmatprep.subr.bf16.mxu1 %v3353_v47  ;;  %3118 = vmatprep.subr.bf16.mxu0 %v3354_v48 }
 0x500   : > { %v1924_v19 = vadd.f32 %v1923_v53, %v1783_v14  ;;  %v1965_v20 = vadd.f32 %v1964_v55, %v1791_v15 }
 0x501   : > { %v1925_v57 = vpop.f32.mrf.mxu1  ;;  %v1966_v60 = vpop.f32.mrf.mxu0 }
 0x502   : > { %v1926_v61 = vadd.f32 %v1925_v57, %v1787_v49  ;;  %v1967_v62 = vadd.f32 %v1966_v60, %v1795_v50  ;;  %3097 = vmatpush3.bf16.msra.mxu1 %v3355_v51  ;;  %3119 = vmatpush3.bf16.msra.mxu0 %v3356_v52  ;;  %v1975_v25 = vmax.f32 %v1924_v19, 0.0  ;;  %v1977_v26 = vmax.f32 %v1965_v20, 0.0 }
 0x503   : > { %v1927_v54 = vpop.f32.mrf.mxu1  ;;  %v1968_v1 = vpop.f32.mrf.mxu0  ;;  %3098 = vmatprep.subr.bf16.mxu1 %v3357_v45  ;;  %3120 = vmatprep.subr.bf16.mxu0 %v3358_v56 }
 0x504   : > { %v1976_v46 = vmax.f32 %v1926_v61, 0.0  ;;  %v1978_v58 = vmax.f32 %v1967_v62, 0.0  ;;  %v1983_v27 = vpack.c.bf16 %v1975_v25, %v1975_v25  ;;  %v1985_v28 = vpack.c.bf16 %v1977_v26, %v1977_v26 }
 0x505   : > { %v1928_v59 = vpop.f32.mrf.mxu1  ;;  %v1969_v2 = vpop.f32.mrf.mxu0 }
 0x506   : > { %v1984_v3 = vpack.c.bf16 %v1976_v46, %v1976_v46  ;;  %v1986_v4 = vpack.c.bf16 %v1978_v58, %v1978_v58  ;;  %3099 = vmatpush3.bf16.msra.mxu1 %v3359_v0  ;;  %3121 = vmatpush3.bf16.msra.mxu0 %v3360_v63 }
 0x507   : > { %3100 = vmatprep.subr.bf16.mxu1 %v3361_v42  ;;  %3122 = vmatprep.subr.bf16.mxu0 %v3362_v41 }
 0x508   : > { %2612 = vmatprep.mubr.bf16.mxu1 %v1984_v3  ;;  %2652 = vmatprep.mubr.bf16.mxu0 %v1986_v4 }
 0x50a   : > { %3101 = vmatpush3.bf16.msra.mxu1 %v3363_v6  ;;  %3123 = vmatpush3.bf16.msra.mxu0 %v3364_v7 }
 0x50b   : > { %3102 = vmatprep.subr.bf16.mxu1 %v3365_v11  ;;  %3124 = vmatprep.subr.bf16.mxu0 %v3366_v12 }
 0x50e   : > { %3103 = vmatpush3.bf16.msra.mxu1 %v3367_v13  ;;  %3125 = vmatpush3.bf16.msra.mxu0 %v3368_v5 }
 0x50f   : > { %3104 = vmatprep.subr.bf16.mxu1 %v3369_v16  ;;  %3126 = vmatprep.subr.bf16.mxu0 %v3370_v17 }
 0x512   : > { %3105 = vmatpush3.bf16.msra.mxu1 %v3371_v18  ;;  %3127 = vmatpush3.bf16.msra.mxu0 %v3372_v8 }
 0x513   : > { %3106 = vmatprep.subr.bf16.mxu1 %v3373_v21  ;;  %3128 = vmatprep.subr.bf16.mxu0 %v3374_v22 }
 0x516   : > { %3107 = vmatpush3.bf16.msra.mxu1 %v3375_v23  ;;  %3129 = vmatpush3.bf16.msra.mxu0 %v3376_v24 }
 0x519   : > { %2613 = vmatmul.mubr.bf16.vlgmr.msra.gmra.mxu1 %v1983_v27  ;;  %2653 = vmatmul.mubr.bf16.vlgmr.msra.gmra.mxu0 %v1985_v28 }
 0x5b9   : > { %v3064_v30 = vpop.f32.mrf.mxu1  ;;  %v3086_v31 = vpop.f32.mrf.mxu0 }
 0x5bb   : > { %v3065_v32 = vpop.f32.mrf.mxu1  ;;  %v3087_v33 = vpop.f32.mrf.mxu0 }
 0x5bc   : > { %v3066_v37 = vadd.f32 %v3065_v32, %v3064_v30  ;;  %v3088_v44 = vadd.f32 %v3087_v33, %v3086_v31 }
 0x5bd   : > { %v3067_v34 = vpop.f32.mrf.mxu1  ;;  %v3089_v35 = vpop.f32.mrf.mxu0 }
 0x5be   : > { %v2535_v39 = vadd.f32 %v3066_v37, %v2115_v38 }
 0x5bf   : > { %v3068_v36 = vpop.f32.mrf.mxu1  ;;  %v3090_v29 = vpop.f32.mrf.mxu0 }
 0x5c0   : > { %v2575_v49 = vadd.f32 %v3088_v44, %v2535_v39 }
 0x5d9   : > { %v3108_v40 = vpop.f32.mrf.mxu1  ;;  %v3130_v43 = vpop.f32.mrf.mxu0 }
 0x5db   : > { %v3109_v47 = vpop.f32.mrf.mxu1  ;;  %v3131_v48 = vpop.f32.mrf.mxu0 }
 0x5dc   : > { %v3110_v50 = vadd.f32 %v3109_v47, %v3108_v40  ;;  %v3132_v55 = vadd.f32 %v3131_v48, %v3130_v43 }
 0x5dd   : > { %v3111_v51 = vpop.f32.mrf.mxu1  ;;  %v3133_v52 = vpop.f32.mrf.mxu0 }
 0x5de   : > { %v2615_v53 = vadd.f32 %v3110_v50, %v2575_v49 }
 0x5df   : > { %v3112_v45 = vpop.f32.mrf.mxu1  ;;  %v3134_v56 = vpop.f32.mrf.mxu0 }
 0x5e0   : > { %v2655_v57 = vadd.f32 %v3132_v55, %v2615_v53 }
 0x5e2   : > { %2661 = vst.msk [vmem:[%s387_s13] sm:$0x1] %vm2660_vm11, %v2655_v57 }
 0x5e3 PF: > { %s21_s17 = sadd.s32 1, %s3383_s17  }
 0x5e4   : > { %p18_p5 = scmp.ge.s32.totalorder %s21_s17, 4  }
 0x5e6   :  { %20 = sbr.rel (!%p18_p5) target bundleno = 1 (0x1), region = 94 }

</bundles_post_ra>
